<compile_context>
chip_gen: v5e
topology: v5e:2x2
jax: 0.10.0
libtpu: 0.0.40
codegen_flags: <defaults>
</compile_context>

<pallas_src>
import jax
import jax.numpy as jnp
from jax import lax
from jax.experimental import pallas as pl
from jax.experimental.pallas import tpu as pltpu


# ----------------------------- Pallas kernel ---------------------------------
def _decode_kernel(
    emb_ref,      # (1, T, E)   this batch row's embedded decode sequence
    h0_ref,       # (1, 1, 2H)
    enc_ref,      # (1, S, 2H)
    w_i_ref,      # (E, 3*2H)   fused input-projection weight  (gate order r|z|n)
    w_h_ref,      # (2H, 3*2H)  fused hidden-projection weight (gate order r|z|n)
    b_i_ref,      # (1, 3*2H)
    b_h_ref,      # (1, 3*2H)
    wfc_c_ref,    # (2H, 2H)    attention_fc weight acting on c_t
    wfc_d_ref,    # (2H, 2H)    attention_fc weight acting on dec
    bfc_ref,      # (1, 2H)
    wout_ref,     # (2H, Vp)    vocab projection, lane-padded to Vp (multiple of 128)
    bout_ref,     # (1, Vp)
    out_ref,      # (1, T, Vp)
    dec_scratch,  # (T, 2H) VMEM
):
    T = emb_ref.shape[1]
    H2 = h0_ref.shape[2]

    def mm(a, b):
        return jnp.dot(a, b, preferred_element_type=jnp.float32)

    # ---- hoisted input projection: one matmul covers all T steps and all 3 gates ----
    x = emb_ref[0]                                         # (T, E)
    gi_all = mm(x, w_i_ref[...]) + b_i_ref[...]            # (T, 3*2H)

    w_h = w_h_ref[...]
    b_h = b_h_ref[...]

    # ---- GRU recurrence (PyTorch gate order r, z, n), fully unrolled (T is static) ----
    h = h0_ref[0]                                          # (1, 2H)
    for t in range(T):
        gh = mm(h, w_h) + b_h                              # (1, 3*2H): single fused h-proj
        gi = gi_all[t:t + 1, :]                            # (1, 3*2H)
        r = jax.nn.sigmoid(gi[:, :H2] + gh[:, :H2])
        z = jax.nn.sigmoid(gi[:, H2:2 * H2] + gh[:, H2:2 * H2])
        n = jnp.tanh(gi[:, 2 * H2:] + r * gh[:, 2 * H2:])
        h = (1.0 - z) * n + z * h                          # (1, 2H)
        dec_scratch[pl.ds(t, 1), :] = h

    dec = dec_scratch[...]                                 # (T, 2H) contiguous tile
    enc = enc_ref[0]                                       # (S, 2H)

    # ---- attention: contract on the shared last dim (no in-kernel transpose) ----
    s = lax.dot_general(dec, enc, (((1,), (1,)), ((), ())),
                        preferred_element_type=jnp.float32)           # (T, S)
    s = s - jnp.max(s, axis=-1, keepdims=True)
    p = jnp.exp(s)
    a = p * pl.reciprocal(jnp.sum(p, axis=-1, keepdims=True), approx=False)
    c = mm(a, enc)                                         # (T, 2H)

    # ---- attention_fc (concat folded into two matmuls) + vocab projection over all T rows ----
    scores = jnp.tanh(mm(c, wfc_c_ref[...]) + mm(dec, wfc_d_ref[...]) + bfc_ref[...])
    out_ref[0] = mm(scores, wout_ref[...]) + bout_ref[...]             # (T, Vp) lane-dense store


# ------------------------------- wrapper --------------------------------------
@jax.jit
def couplets_decode_forward(decode_seq, hidden, enc_outputs, params):
    embedded = params["embedding"][decode_seq]             # (B, T, E) gather (glue)
    B, T, E = embedded.shape
    H2 = hidden.shape[-1]
    S = enc_outputs.shape[1]
    V = params["w_out"].shape[0]
    Vp = ((V + 127) // 128) * 128                          # lane-dense padded vocab width

    h0 = jnp.transpose(hidden, (1, 0, 2))                  # (B, 1, 2H)

    # Fused GRU weights: x @ w_ih.T keeps PyTorch's r|z|n column order automatically.
    w_i = params["w_ih"].T                                 # (E, 3*2H)
    w_h = params["w_hh"].T                                 # (2H, 3*2H)
    b_i = params["b_ih"].reshape(1, -1)                    # (1, 3*2H)
    b_h = params["b_hh"].reshape(1, -1)                    # (1, 3*2H)

    # attention_fc: Linear(4H, 2H); first half of the input dim multiplies c_t, second half dec.
    wfc_c = params["w_fc"][:, :H2].T                       # (2H, 2H)
    wfc_d = params["w_fc"][:, H2:].T                       # (2H, 2H)
    bfc = params["b_fc"].reshape(1, -1)                    # (1, 2H)

    # vocab projection, zero-padded to a multiple of 128 lanes for unmasked stores
    wout = jnp.zeros((H2, Vp), jnp.float32).at[:, :V].set(params["w_out"].T)
    bout = jnp.zeros((1, Vp), jnp.float32).at[:, :V].set(params["b_out"].reshape(1, -1))

    # TODO(synk): at production vocab sizes (~5-10k) add a grid axis / output BlockSpec over V
    # so logits + w_out tiles fit v7x's 64 MiB VMEM; not needed at these demo sizes.

    logits_p = pl.pallas_call(
        _decode_kernel,
        out_shape=jax.ShapeDtypeStruct((B, T, Vp), jnp.float32),
        grid=(B,),
        in_specs=[
            pl.BlockSpec((1, T, E), lambda b: (b, 0, 0)),      # embedded
            pl.BlockSpec((1, 1, H2), lambda b: (b, 0, 0)),     # h0
            pl.BlockSpec((1, S, H2), lambda b: (b, 0, 0)),     # enc_outputs
            pl.BlockSpec((E, 3 * H2), lambda b: (0, 0)),       # w_i (resident, index fixed)
            pl.BlockSpec((H2, 3 * H2), lambda b: (0, 0)),      # w_h
            pl.BlockSpec((1, 3 * H2), lambda b: (0, 0)),       # b_i
            pl.BlockSpec((1, 3 * H2), lambda b: (0, 0)),       # b_h
            pl.BlockSpec((H2, H2), lambda b: (0, 0)),          # wfc_c
            pl.BlockSpec((H2, H2), lambda b: (0, 0)),          # wfc_d
            pl.BlockSpec((1, H2), lambda b: (0, 0)),           # bfc
            pl.BlockSpec((H2, Vp), lambda b: (0, 0)),          # wout (padded)
            pl.BlockSpec((1, Vp), lambda b: (0, 0)),           # bout (padded)
        ],
        out_specs=pl.BlockSpec((1, T, Vp), lambda b: (b, 0, 0)),
        scratch_shapes=[pltpu.VMEM((T, H2), jnp.float32)],
        compiler_params=pltpu.CompilerParams(dimension_semantics=("parallel",)),
    )(embedded, h0, enc_outputs, w_i, w_h, b_i, b_h, wfc_c, wfc_d, bfc, wout, bout)

    logits = logits_p[:, :, :V]
    # PyTorch module returns the *input* hidden, not the updated GRU hidden.
    return logits, hidden


# ---------------------------- pure-JAX reference -------------------------------
def ref_forward(decode_seq, hidden, enc_outputs, params):
    emb = params["embedding"][decode_seq]                  # (B, T, E)
    h = hidden[0]
    wir, wiz, win = jnp.split(params["w_ih"], 3, axis=0)
    whr, whz, whn = jnp.split(params["w_hh"], 3, axis=0)
    bir, biz, b_in = jnp.split(params["b_ih"], 3)
    bhr, bhz, bhn = jnp.split(params["b_hh"], 3)

    def step(h, x):
        r = jax.nn.sigmoid(x @ wir.T + bir + h @ whr.T + bhr)
        z = jax.nn.sigmoid(x @ wiz.T + biz + h @ whz.T + bhz)
        n = jnp.tanh(x @ win.T + b_in + r * (h @ whn.T + bhn))
        h_new = (1.0 - z) * n + z * h
        return h_new, h_new

    _, dec = lax.scan(step, h, jnp.transpose(emb, (1, 0, 2)))
    dec = jnp.transpose(dec, (1, 0, 2))                    # (B, T, 2H)

    s = jnp.einsum("btd,bsd->bts", dec, enc_outputs)
    a = jax.nn.softmax(s, axis=-1)
    c = jnp.einsum("bts,bsd->btd", a, enc_outputs)
    cat = jnp.concatenate([c, dec], axis=-1)
    scores = jnp.tanh(cat @ params["w_fc"].T + params["b_fc"])
    logits = scores @ params["w_out"].T + params["b_out"]
    return logits, hidden


# ---------------------------------- main ---------------------------------------
if __name__ == "__main__":
    vocab_size = 64
    embedding_dim = 32
    hidden_dim = 16          # GRU hidden = 2*hidden_dim = 32
    B, T, S = 2, 8, 8
    twoH = 2 * hidden_dim

    key = jax.random.PRNGKey(0)
    ks = jax.random.split(key, 12)

    params = {
        "embedding": jax.random.normal(ks[0], (vocab_size, embedding_dim), jnp.float32) * 0.1,
        "w_ih": jax.random.normal(ks[1], (3 * twoH, embedding_dim), jnp.float32) * 0.1,
        "w_hh": jax.random.normal(ks[2], (3 * twoH, twoH), jnp.float32) * 0.1,
        "b_ih": jax.random.normal(ks[3], (3 * twoH,), jnp.float32) * 0.1,
        "b_hh": jax.random.normal(ks[4], (3 * twoH,), jnp.float32) * 0.1,
        "w_fc": jax.random.normal(ks[5], (twoH, 2 * twoH), jnp.float32) * 0.1,     # Linear(4H, 2H)
        "b_fc": jax.random.normal(ks[6], (twoH,), jnp.float32) * 0.1,
        "w_out": jax.random.normal(ks[7], (vocab_size, twoH), jnp.float32) * 0.1,  # Linear(2H, V)
        "b_out": jax.random.normal(ks[8], (vocab_size,), jnp.float32) * 0.1,
    }

    decode_seq = jax.random.randint(ks[9], (B, T), 0, vocab_size, dtype=jnp.int32)
    hidden = jax.random.normal(ks[10], (1, B, twoH), jnp.float32) * 0.1
    enc_outputs = jax.random.normal(ks[11], (B, S, twoH), jnp.float32) * 0.1

    logits, hid_out = couplets_decode_forward(decode_seq, hidden, enc_outputs, params)
    logits = jax.block_until_ready(logits)

    ref_logits, _ = ref_forward(decode_seq, hidden, enc_outputs, params)

    assert logits.shape == (B, T, vocab_size), logits.shape
    assert hid_out.shape == (1, B, twoH), hid_out.shape
    assert jnp.allclose(logits, ref_logits, atol=5e-3, rtol=5e-3), float(
        jnp.max(jnp.abs(logits - ref_logits))
    )

    print("KERNEL_OK")
</pallas_src>

<mosaic_0001>
module attributes {stable_mosaic.version = 11 : i64} {
  func.func @_decode_kernel(%arg0: i32, %arg1: memref<1x8x32xf32, #tpu.memory_space<vmem>>, %arg2: memref<1x1x32xf32, #tpu.memory_space<vmem>>, %arg3: memref<1x8x32xf32, #tpu.memory_space<vmem>>, %arg4: memref<32x96xf32, #tpu.memory_space<vmem>>, %arg5: memref<32x96xf32, #tpu.memory_space<vmem>>, %arg6: memref<1x96xf32, #tpu.memory_space<vmem>>, %arg7: memref<1x96xf32, #tpu.memory_space<vmem>>, %arg8: memref<32x32xf32, #tpu.memory_space<vmem>>, %arg9: memref<32x32xf32, #tpu.memory_space<vmem>>, %arg10: memref<1x32xf32, #tpu.memory_space<vmem>>, %arg11: memref<32x128xf32, #tpu.memory_space<vmem>>, %arg12: memref<1x128xf32, #tpu.memory_space<vmem>>, %arg13: memref<1x8x128xf32, #tpu.memory_space<vmem>>, %arg14: memref<8x32xf32, #tpu.memory_space<vmem>>) attributes {dimension_semantics = [#tpu.dimension_semantics<parallel>], iteration_bounds = array<i64: 2>, scalar_prefetch = 0 : i64, scratch_operands = 1 : i64, tpu.core_type = #tpu.core_type<tc>, window_params = [{transform_indices = @transform_0, window_bounds = array<i64: 1, 8, 32>}, {transform_indices = @transform_1, window_bounds = array<i64: 1, 1, 32>}, {transform_indices = @transform_2, window_bounds = array<i64: 1, 8, 32>}, {pipeline_mode = #tpu.pipeline_mode<synchronous>, transform_indices = @transform_3, window_bounds = array<i64: 32, 96>}, {pipeline_mode = #tpu.pipeline_mode<synchronous>, transform_indices = @transform_4, window_bounds = array<i64: 32, 96>}, {pipeline_mode = #tpu.pipeline_mode<synchronous>, transform_indices = @transform_5, window_bounds = array<i64: 1, 96>}, {pipeline_mode = #tpu.pipeline_mode<synchronous>, transform_indices = @transform_6, window_bounds = array<i64: 1, 96>}, {pipeline_mode = #tpu.pipeline_mode<synchronous>, transform_indices = @transform_7, window_bounds = array<i64: 32, 32>}, {pipeline_mode = #tpu.pipeline_mode<synchronous>, transform_indices = @transform_8, window_bounds = array<i64: 32, 32>}, {pipeline_mode = #tpu.pipeline_mode<synchronous>, transform_indices = @transform_9, window_bounds = array<i64: 1, 32>}, {pipeline_mode = #tpu.pipeline_mode<synchronous>, transform_indices = @transform_10, window_bounds = array<i64: 32, 128>}, {pipeline_mode = #tpu.pipeline_mode<synchronous>, transform_indices = @transform_11, window_bounds = array<i64: 1, 128>}, {transform_indices = @transform_12, window_bounds = array<i64: 1, 8, 128>}]} {
    %c0 = arith.constant 0 : index
    %c0_0 = arith.constant 0 : index
    %c0_1 = arith.constant 0 : index
    %0 = vector.load %arg1[%c0, %c0_0, %c0_1] : memref<1x8x32xf32, #tpu.memory_space<vmem>>, vector<1x8x32xf32>
    %1 = vector.shape_cast %0 : vector<1x8x32xf32> to vector<8x32xf32>
    %c0_2 = arith.constant 0 : index
    %c0_3 = arith.constant 0 : index
    %2 = vector.load %arg4[%c0_2, %c0_3] : memref<32x96xf32, #tpu.memory_space<vmem>>, vector<32x96xf32>
    %cst = arith.constant dense<0.000000e+00> : vector<8x96xf32>
    %3 = tpu.matmul %1, %2, %cst {dimension_numbers = #tpu.dot_dimension_numbers<[1], [0], [0], [1], [0, 0, 1, 1], [], []>} : vector<8x32xf32>, vector<32x96xf32>, vector<8x96xf32> -> vector<8x96xf32>
    %c0_4 = arith.constant 0 : index
    %c0_5 = arith.constant 0 : index
    %4 = vector.load %arg6[%c0_4, %c0_5] : memref<1x96xf32, #tpu.memory_space<vmem>>, vector<1x96xf32>
    %5 = vector.broadcast %4 : vector<1x96xf32> to vector<8x96xf32>
    %6 = arith.addf %3, %5 : vector<8x96xf32>
    %c0_6 = arith.constant 0 : index
    %c0_7 = arith.constant 0 : index
    %7 = vector.load %arg5[%c0_6, %c0_7] : memref<32x96xf32, #tpu.memory_space<vmem>>, vector<32x96xf32>
    %c0_8 = arith.constant 0 : index
    %c0_9 = arith.constant 0 : index
    %8 = vector.load %arg7[%c0_8, %c0_9] : memref<1x96xf32, #tpu.memory_space<vmem>>, vector<1x96xf32>
    %c0_10 = arith.constant 0 : index
    %c0_11 = arith.constant 0 : index
    %c0_12 = arith.constant 0 : index
    %9 = vector.load %arg2[%c0_10, %c0_11, %c0_12] : memref<1x1x32xf32, #tpu.memory_space<vmem>>, vector<1x1x32xf32>
    %10 = vector.shape_cast %9 : vector<1x1x32xf32> to vector<1x32xf32>
    %cst_13 = arith.constant dense<0.000000e+00> : vector<1x96xf32>
    %11 = tpu.matmul %10, %7, %cst_13 {dimension_numbers = #tpu.dot_dimension_numbers<[1], [0], [0], [1], [0, 0, 1, 1], [], []>} : vector<1x32xf32>, vector<32x96xf32>, vector<1x96xf32> -> vector<1x96xf32>
    %12 = arith.addf %11, %8 : vector<1x96xf32>
    %13 = vector.extract_strided_slice %6 {offsets = [0, 0], sizes = [1, 96], strides = [1, 1]} : vector<8x96xf32> to vector<1x96xf32>
    %14 = vector.extract_strided_slice %13 {offsets = [0, 0], sizes = [1, 32], strides = [1, 1]} : vector<1x96xf32> to vector<1x32xf32>
    %15 = vector.extract_strided_slice %12 {offsets = [0, 0], sizes = [1, 32], strides = [1, 1]} : vector<1x96xf32> to vector<1x32xf32>
    %16 = arith.addf %14, %15 : vector<1x32xf32>
    %17 = arith.negf %16 : vector<1x32xf32>
    %18 = math.exp %17 : vector<1x32xf32>
    %cst_14 = arith.constant 1.000000e+00 : f32
    %19 = vector.broadcast %cst_14 : f32 to vector<1x32xf32>
    %20 = arith.addf %19, %18 : vector<1x32xf32>
    %21 = arith.divf %19, %20 : vector<1x32xf32>
    %22 = vector.extract_strided_slice %13 {offsets = [0, 32], sizes = [1, 32], strides = [1, 1]} : vector<1x96xf32> to vector<1x32xf32>
    %23 = vector.extract_strided_slice %12 {offsets = [0, 32], sizes = [1, 32], strides = [1, 1]} : vector<1x96xf32> to vector<1x32xf32>
    %24 = arith.addf %22, %23 : vector<1x32xf32>
    %25 = arith.negf %24 : vector<1x32xf32>
    %26 = math.exp %25 : vector<1x32xf32>
    %cst_15 = arith.constant 1.000000e+00 : f32
    %27 = vector.broadcast %cst_15 : f32 to vector<1x32xf32>
    %28 = arith.addf %27, %26 : vector<1x32xf32>
    %29 = arith.divf %27, %28 : vector<1x32xf32>
    %30 = vector.extract_strided_slice %13 {offsets = [0, 64], sizes = [1, 32], strides = [1, 1]} : vector<1x96xf32> to vector<1x32xf32>
    %31 = vector.extract_strided_slice %12 {offsets = [0, 64], sizes = [1, 32], strides = [1, 1]} : vector<1x96xf32> to vector<1x32xf32>
    %32 = arith.mulf %21, %31 : vector<1x32xf32>
    %33 = arith.addf %30, %32 : vector<1x32xf32>
    %34 = math.tanh %33 : vector<1x32xf32>
    %cst_16 = arith.constant 1.000000e+00 : f32
    %35 = vector.broadcast %cst_16 : f32 to vector<1x32xf32>
    %36 = arith.subf %35, %29 : vector<1x32xf32>
    %37 = arith.mulf %36, %34 : vector<1x32xf32>
    %38 = arith.mulf %29, %10 : vector<1x32xf32>
    %39 = arith.addf %37, %38 : vector<1x32xf32>
    %c0_17 = arith.constant 0 : index
    %c0_18 = arith.constant 0 : index
    %40 = vector.load %arg14[%c0_17, %c0_18] : memref<8x32xf32, #tpu.memory_space<vmem>>, vector<1x32xf32>
    tpu.vector_store %arg14[%c0_17, %c0_18], %39 {strides = array<i32>} : memref<8x32xf32, #tpu.memory_space<vmem>>, vector<1x32xf32>,
    %cst_19 = arith.constant dense<0.000000e+00> : vector<1x96xf32>
    %41 = tpu.matmul %39, %7, %cst_19 {dimension_numbers = #tpu.dot_dimension_numbers<[1], [0], [0], [1], [0, 0, 1, 1], [], []>} : vector<1x32xf32>, vector<32x96xf32>, vector<1x96xf32> -> vector<1x96xf32>
    %42 = arith.addf %41, %8 : vector<1x96xf32>
    %43 = vector.extract_strided_slice %6 {offsets = [1, 0], sizes = [1, 96], strides = [1, 1]} : vector<8x96xf32> to vector<1x96xf32>
    %44 = vector.extract_strided_slice %43 {offsets = [0, 0], sizes = [1, 32], strides = [1, 1]} : vector<1x96xf32> to vector<1x32xf32>
    %45 = vector.extract_strided_slice %42 {offsets = [0, 0], sizes = [1, 32], strides = [1, 1]} : vector<1x96xf32> to vector<1x32xf32>
    %46 = arith.addf %44, %45 : vector<1x32xf32>
    %47 = arith.negf %46 : vector<1x32xf32>
    %48 = math.exp %47 : vector<1x32xf32>
    %cst_20 = arith.constant 1.000000e+00 : f32
    %49 = vector.broadcast %cst_20 : f32 to vector<1x32xf32>
    %50 = arith.addf %49, %48 : vector<1x32xf32>
    %51 = arith.divf %49, %50 : vector<1x32xf32>
    %52 = vector.extract_strided_slice %43 {offsets = [0, 32], sizes = [1, 32], strides = [1, 1]} : vector<1x96xf32> to vector<1x32xf32>
    %53 = vector.extract_strided_slice %42 {offsets = [0, 32], sizes = [1, 32], strides = [1, 1]} : vector<1x96xf32> to vector<1x32xf32>
    %54 = arith.addf %52, %53 : vector<1x32xf32>
    %55 = arith.negf %54 : vector<1x32xf32>
    %56 = math.exp %55 : vector<1x32xf32>
    %cst_21 = arith.constant 1.000000e+00 : f32
    %57 = vector.broadcast %cst_21 : f32 to vector<1x32xf32>
    %58 = arith.addf %57, %56 : vector<1x32xf32>
    %59 = arith.divf %57, %58 : vector<1x32xf32>
    %60 = vector.extract_strided_slice %43 {offsets = [0, 64], sizes = [1, 32], strides = [1, 1]} : vector<1x96xf32> to vector<1x32xf32>
    %61 = vector.extract_strided_slice %42 {offsets = [0, 64], sizes = [1, 32], strides = [1, 1]} : vector<1x96xf32> to vector<1x32xf32>
    %62 = arith.mulf %51, %61 : vector<1x32xf32>
    %63 = arith.addf %60, %62 : vector<1x32xf32>
    %64 = math.tanh %63 : vector<1x32xf32>
    %cst_22 = arith.constant 1.000000e+00 : f32
    %65 = vector.broadcast %cst_22 : f32 to vector<1x32xf32>
    %66 = arith.subf %65, %59 : vector<1x32xf32>
    %67 = arith.mulf %66, %64 : vector<1x32xf32>
    %68 = arith.mulf %59, %39 : vector<1x32xf32>
    %69 = arith.addf %67, %68 : vector<1x32xf32>
    %c1 = arith.constant 1 : index
    %c0_23 = arith.constant 0 : index
    %70 = vector.load %arg14[%c1, %c0_23] : memref<8x32xf32, #tpu.memory_space<vmem>>, vector<1x32xf32>
    tpu.vector_store %arg14[%c1, %c0_23], %69 {strides = array<i32>} : memref<8x32xf32, #tpu.memory_space<vmem>>, vector<1x32xf32>,
    %cst_24 = arith.constant dense<0.000000e+00> : vector<1x96xf32>
    %71 = tpu.matmul %69, %7, %cst_24 {dimension_numbers = #tpu.dot_dimension_numbers<[1], [0], [0], [1], [0, 0, 1, 1], [], []>} : vector<1x32xf32>, vector<32x96xf32>, vector<1x96xf32> -> vector<1x96xf32>
    %72 = arith.addf %71, %8 : vector<1x96xf32>
    %73 = vector.extract_strided_slice %6 {offsets = [2, 0], sizes = [1, 96], strides = [1, 1]} : vector<8x96xf32> to vector<1x96xf32>
    %74 = vector.extract_strided_slice %73 {offsets = [0, 0], sizes = [1, 32], strides = [1, 1]} : vector<1x96xf32> to vector<1x32xf32>
    %75 = vector.extract_strided_slice %72 {offsets = [0, 0], sizes = [1, 32], strides = [1, 1]} : vector<1x96xf32> to vector<1x32xf32>
    %76 = arith.addf %74, %75 : vector<1x32xf32>
    %77 = arith.negf %76 : vector<1x32xf32>
    %78 = math.exp %77 : vector<1x32xf32>
    %cst_25 = arith.constant 1.000000e+00 : f32
    %79 = vector.broadcast %cst_25 : f32 to vector<1x32xf32>
    %80 = arith.addf %79, %78 : vector<1x32xf32>
    %81 = arith.divf %79, %80 : vector<1x32xf32>
    %82 = vector.extract_strided_slice %73 {offsets = [0, 32], sizes = [1, 32], strides = [1, 1]} : vector<1x96xf32> to vector<1x32xf32>
    %83 = vector.extract_strided_slice %72 {offsets = [0, 32], sizes = [1, 32], strides = [1, 1]} : vector<1x96xf32> to vector<1x32xf32>
    %84 = arith.addf %82, %83 : vector<1x32xf32>
    %85 = arith.negf %84 : vector<1x32xf32>
    %86 = math.exp %85 : vector<1x32xf32>
    %cst_26 = arith.constant 1.000000e+00 : f32
    %87 = vector.broadcast %cst_26 : f32 to vector<1x32xf32>
    %88 = arith.addf %87, %86 : vector<1x32xf32>
    %89 = arith.divf %87, %88 : vector<1x32xf32>
    %90 = vector.extract_strided_slice %73 {offsets = [0, 64], sizes = [1, 32], strides = [1, 1]} : vector<1x96xf32> to vector<1x32xf32>
    %91 = vector.extract_strided_slice %72 {offsets = [0, 64], sizes = [1, 32], strides = [1, 1]} : vector<1x96xf32> to vector<1x32xf32>
    %92 = arith.mulf %81, %91 : vector<1x32xf32>
    %93 = arith.addf %90, %92 : vector<1x32xf32>
    %94 = math.tanh %93 : vector<1x32xf32>
    %cst_27 = arith.constant 1.000000e+00 : f32
    %95 = vector.broadcast %cst_27 : f32 to vector<1x32xf32>
    %96 = arith.subf %95, %89 : vector<1x32xf32>
    %97 = arith.mulf %96, %94 : vector<1x32xf32>
    %98 = arith.mulf %89, %69 : vector<1x32xf32>
    %99 = arith.addf %97, %98 : vector<1x32xf32>
    %c2 = arith.constant 2 : index
    %c0_28 = arith.constant 0 : index
    %100 = vector.load %arg14[%c2, %c0_28] : memref<8x32xf32, #tpu.memory_space<vmem>>, vector<1x32xf32>
    tpu.vector_store %arg14[%c2, %c0_28], %99 {strides = array<i32>} : memref<8x32xf32, #tpu.memory_space<vmem>>, vector<1x32xf32>,
    %cst_29 = arith.constant dense<0.000000e+00> : vector<1x96xf32>
    %101 = tpu.matmul %99, %7, %cst_29 {dimension_numbers = #tpu.dot_dimension_numbers<[1], [0], [0], [1], [0, 0, 1, 1], [], []>} : vector<1x32xf32>, vector<32x96xf32>, vector<1x96xf32> -> vector<1x96xf32>
    %102 = arith.addf %101, %8 : vector<1x96xf32>
    %103 = vector.extract_strided_slice %6 {offsets = [3, 0], sizes = [1, 96], strides = [1, 1]} : vector<8x96xf32> to vector<1x96xf32>
    %104 = vector.extract_strided_slice %103 {offsets = [0, 0], sizes = [1, 32], strides = [1, 1]} : vector<1x96xf32> to vector<1x32xf32>
    %105 = vector.extract_strided_slice %102 {offsets = [0, 0], sizes = [1, 32], strides = [1, 1]} : vector<1x96xf32> to vector<1x32xf32>
    %106 = arith.addf %104, %105 : vector<1x32xf32>
    %107 = arith.negf %106 : vector<1x32xf32>
    %108 = math.exp %107 : vector<1x32xf32>
    %cst_30 = arith.constant 1.000000e+00 : f32
    %109 = vector.broadcast %cst_30 : f32 to vector<1x32xf32>
    %110 = arith.addf %109, %108 : vector<1x32xf32>
    %111 = arith.divf %109, %110 : vector<1x32xf32>
    %112 = vector.extract_strided_slice %103 {offsets = [0, 32], sizes = [1, 32], strides = [1, 1]} : vector<1x96xf32> to vector<1x32xf32>
    %113 = vector.extract_strided_slice %102 {offsets = [0, 32], sizes = [1, 32], strides = [1, 1]} : vector<1x96xf32> to vector<1x32xf32>
    %114 = arith.addf %112, %113 : vector<1x32xf32>
    %115 = arith.negf %114 : vector<1x32xf32>
    %116 = math.exp %115 : vector<1x32xf32>
    %cst_31 = arith.constant 1.000000e+00 : f32
    %117 = vector.broadcast %cst_31 : f32 to vector<1x32xf32>
    %118 = arith.addf %117, %116 : vector<1x32xf32>
    %119 = arith.divf %117, %118 : vector<1x32xf32>
    %120 = vector.extract_strided_slice %103 {offsets = [0, 64], sizes = [1, 32], strides = [1, 1]} : vector<1x96xf32> to vector<1x32xf32>
    %121 = vector.extract_strided_slice %102 {offsets = [0, 64], sizes = [1, 32], strides = [1, 1]} : vector<1x96xf32> to vector<1x32xf32>
    %122 = arith.mulf %111, %121 : vector<1x32xf32>
    %123 = arith.addf %120, %122 : vector<1x32xf32>
    %124 = math.tanh %123 : vector<1x32xf32>
    %cst_32 = arith.constant 1.000000e+00 : f32
    %125 = vector.broadcast %cst_32 : f32 to vector<1x32xf32>
    %126 = arith.subf %125, %119 : vector<1x32xf32>
    %127 = arith.mulf %126, %124 : vector<1x32xf32>
    %128 = arith.mulf %119, %99 : vector<1x32xf32>
    %129 = arith.addf %127, %128 : vector<1x32xf32>
    %c3 = arith.constant 3 : index
    %c0_33 = arith.constant 0 : index
    %130 = vector.load %arg14[%c3, %c0_33] : memref<8x32xf32, #tpu.memory_space<vmem>>, vector<1x32xf32>
    tpu.vector_store %arg14[%c3, %c0_33], %129 {strides = array<i32>} : memref<8x32xf32, #tpu.memory_space<vmem>>, vector<1x32xf32>,
    %cst_34 = arith.constant dense<0.000000e+00> : vector<1x96xf32>
    %131 = tpu.matmul %129, %7, %cst_34 {dimension_numbers = #tpu.dot_dimension_numbers<[1], [0], [0], [1], [0, 0, 1, 1], [], []>} : vector<1x32xf32>, vector<32x96xf32>, vector<1x96xf32> -> vector<1x96xf32>
    %132 = arith.addf %131, %8 : vector<1x96xf32>
    %133 = vector.extract_strided_slice %6 {offsets = [4, 0], sizes = [1, 96], strides = [1, 1]} : vector<8x96xf32> to vector<1x96xf32>
    %134 = vector.extract_strided_slice %133 {offsets = [0, 0], sizes = [1, 32], strides = [1, 1]} : vector<1x96xf32> to vector<1x32xf32>
    %135 = vector.extract_strided_slice %132 {offsets = [0, 0], sizes = [1, 32], strides = [1, 1]} : vector<1x96xf32> to vector<1x32xf32>
    %136 = arith.addf %134, %135 : vector<1x32xf32>
    %137 = arith.negf %136 : vector<1x32xf32>
    %138 = math.exp %137 : vector<1x32xf32>
    %cst_35 = arith.constant 1.000000e+00 : f32
    %139 = vector.broadcast %cst_35 : f32 to vector<1x32xf32>
    %140 = arith.addf %139, %138 : vector<1x32xf32>
    %141 = arith.divf %139, %140 : vector<1x32xf32>
    %142 = vector.extract_strided_slice %133 {offsets = [0, 32], sizes = [1, 32], strides = [1, 1]} : vector<1x96xf32> to vector<1x32xf32>
    %143 = vector.extract_strided_slice %132 {offsets = [0, 32], sizes = [1, 32], strides = [1, 1]} : vector<1x96xf32> to vector<1x32xf32>
    %144 = arith.addf %142, %143 : vector<1x32xf32>
    %145 = arith.negf %144 : vector<1x32xf32>
    %146 = math.exp %145 : vector<1x32xf32>
    %cst_36 = arith.constant 1.000000e+00 : f32
    %147 = vector.broadcast %cst_36 : f32 to vector<1x32xf32>
    %148 = arith.addf %147, %146 : vector<1x32xf32>
    %149 = arith.divf %147, %148 : vector<1x32xf32>
    %150 = vector.extract_strided_slice %133 {offsets = [0, 64], sizes = [1, 32], strides = [1, 1]} : vector<1x96xf32> to vector<1x32xf32>
    %151 = vector.extract_strided_slice %132 {offsets = [0, 64], sizes = [1, 32], strides = [1, 1]} : vector<1x96xf32> to vector<1x32xf32>
    %152 = arith.mulf %141, %151 : vector<1x32xf32>
    %153 = arith.addf %150, %152 : vector<1x32xf32>
    %154 = math.tanh %153 : vector<1x32xf32>
    %cst_37 = arith.constant 1.000000e+00 : f32
    %155 = vector.broadcast %cst_37 : f32 to vector<1x32xf32>
    %156 = arith.subf %155, %149 : vector<1x32xf32>
    %157 = arith.mulf %156, %154 : vector<1x32xf32>
    %158 = arith.mulf %149, %129 : vector<1x32xf32>
    %159 = arith.addf %157, %158 : vector<1x32xf32>
    %c4 = arith.constant 4 : index
    %c0_38 = arith.constant 0 : index
    %160 = vector.load %arg14[%c4, %c0_38] : memref<8x32xf32, #tpu.memory_space<vmem>>, vector<1x32xf32>
    tpu.vector_store %arg14[%c4, %c0_38], %159 {strides = array<i32>} : memref<8x32xf32, #tpu.memory_space<vmem>>, vector<1x32xf32>,
    %cst_39 = arith.constant dense<0.000000e+00> : vector<1x96xf32>
    %161 = tpu.matmul %159, %7, %cst_39 {dimension_numbers = #tpu.dot_dimension_numbers<[1], [0], [0], [1], [0, 0, 1, 1], [], []>} : vector<1x32xf32>, vector<32x96xf32>, vector<1x96xf32> -> vector<1x96xf32>
    %162 = arith.addf %161, %8 : vector<1x96xf32>
    %163 = vector.extract_strided_slice %6 {offsets = [5, 0], sizes = [1, 96], strides = [1, 1]} : vector<8x96xf32> to vector<1x96xf32>
    %164 = vector.extract_strided_slice %163 {offsets = [0, 0], sizes = [1, 32], strides = [1, 1]} : vector<1x96xf32> to vector<1x32xf32>
    %165 = vector.extract_strided_slice %162 {offsets = [0, 0], sizes = [1, 32], strides = [1, 1]} : vector<1x96xf32> to vector<1x32xf32>
    %166 = arith.addf %164, %165 : vector<1x32xf32>
    %167 = arith.negf %166 : vector<1x32xf32>
    %168 = math.exp %167 : vector<1x32xf32>
    %cst_40 = arith.constant 1.000000e+00 : f32
    %169 = vector.broadcast %cst_40 : f32 to vector<1x32xf32>
    %170 = arith.addf %169, %168 : vector<1x32xf32>
    %171 = arith.divf %169, %170 : vector<1x32xf32>
    %172 = vector.extract_strided_slice %163 {offsets = [0, 32], sizes = [1, 32], strides = [1, 1]} : vector<1x96xf32> to vector<1x32xf32>
    %173 = vector.extract_strided_slice %162 {offsets = [0, 32], sizes = [1, 32], strides = [1, 1]} : vector<1x96xf32> to vector<1x32xf32>
    %174 = arith.addf %172, %173 : vector<1x32xf32>
    %175 = arith.negf %174 : vector<1x32xf32>
    %176 = math.exp %175 : vector<1x32xf32>
    %cst_41 = arith.constant 1.000000e+00 : f32
    %177 = vector.broadcast %cst_41 : f32 to vector<1x32xf32>
    %178 = arith.addf %177, %176 : vector<1x32xf32>
    %179 = arith.divf %177, %178 : vector<1x32xf32>
    %180 = vector.extract_strided_slice %163 {offsets = [0, 64], sizes = [1, 32], strides = [1, 1]} : vector<1x96xf32> to vector<1x32xf32>
    %181 = vector.extract_strided_slice %162 {offsets = [0, 64], sizes = [1, 32], strides = [1, 1]} : vector<1x96xf32> to vector<1x32xf32>
    %182 = arith.mulf %171, %181 : vector<1x32xf32>
    %183 = arith.addf %180, %182 : vector<1x32xf32>
    %184 = math.tanh %183 : vector<1x32xf32>
    %cst_42 = arith.constant 1.000000e+00 : f32
    %185 = vector.broadcast %cst_42 : f32 to vector<1x32xf32>
    %186 = arith.subf %185, %179 : vector<1x32xf32>
    %187 = arith.mulf %186, %184 : vector<1x32xf32>
    %188 = arith.mulf %179, %159 : vector<1x32xf32>
    %189 = arith.addf %187, %188 : vector<1x32xf32>
    %c5 = arith.constant 5 : index
    %c0_43 = arith.constant 0 : index
    %190 = vector.load %arg14[%c5, %c0_43] : memref<8x32xf32, #tpu.memory_space<vmem>>, vector<1x32xf32>
    tpu.vector_store %arg14[%c5, %c0_43], %189 {strides = array<i32>} : memref<8x32xf32, #tpu.memory_space<vmem>>, vector<1x32xf32>,
    %cst_44 = arith.constant dense<0.000000e+00> : vector<1x96xf32>
    %191 = tpu.matmul %189, %7, %cst_44 {dimension_numbers = #tpu.dot_dimension_numbers<[1], [0], [0], [1], [0, 0, 1, 1], [], []>} : vector<1x32xf32>, vector<32x96xf32>, vector<1x96xf32> -> vector<1x96xf32>
    %192 = arith.addf %191, %8 : vector<1x96xf32>
    %193 = vector.extract_strided_slice %6 {offsets = [6, 0], sizes = [1, 96], strides = [1, 1]} : vector<8x96xf32> to vector<1x96xf32>
    %194 = vector.extract_strided_slice %193 {offsets = [0, 0], sizes = [1, 32], strides = [1, 1]} : vector<1x96xf32> to vector<1x32xf32>
    %195 = vector.extract_strided_slice %192 {offsets = [0, 0], sizes = [1, 32], strides = [1, 1]} : vector<1x96xf32> to vector<1x32xf32>
    %196 = arith.addf %194, %195 : vector<1x32xf32>
    %197 = arith.negf %196 : vector<1x32xf32>
    %198 = math.exp %197 : vector<1x32xf32>
    %cst_45 = arith.constant 1.000000e+00 : f32
    %199 = vector.broadcast %cst_45 : f32 to vector<1x32xf32>
    %200 = arith.addf %199, %198 : vector<1x32xf32>
    %201 = arith.divf %199, %200 : vector<1x32xf32>
    %202 = vector.extract_strided_slice %193 {offsets = [0, 32], sizes = [1, 32], strides = [1, 1]} : vector<1x96xf32> to vector<1x32xf32>
    %203 = vector.extract_strided_slice %192 {offsets = [0, 32], sizes = [1, 32], strides = [1, 1]} : vector<1x96xf32> to vector<1x32xf32>
    %204 = arith.addf %202, %203 : vector<1x32xf32>
    %205 = arith.negf %204 : vector<1x32xf32>
    %206 = math.exp %205 : vector<1x32xf32>
    %cst_46 = arith.constant 1.000000e+00 : f32
    %207 = vector.broadcast %cst_46 : f32 to vector<1x32xf32>
    %208 = arith.addf %207, %206 : vector<1x32xf32>
    %209 = arith.divf %207, %208 : vector<1x32xf32>
    %210 = vector.extract_strided_slice %193 {offsets = [0, 64], sizes = [1, 32], strides = [1, 1]} : vector<1x96xf32> to vector<1x32xf32>
    %211 = vector.extract_strided_slice %192 {offsets = [0, 64], sizes = [1, 32], strides = [1, 1]} : vector<1x96xf32> to vector<1x32xf32>
    %212 = arith.mulf %201, %211 : vector<1x32xf32>
    %213 = arith.addf %210, %212 : vector<1x32xf32>
    %214 = math.tanh %213 : vector<1x32xf32>
    %cst_47 = arith.constant 1.000000e+00 : f32
    %215 = vector.broadcast %cst_47 : f32 to vector<1x32xf32>
    %216 = arith.subf %215, %209 : vector<1x32xf32>
    %217 = arith.mulf %216, %214 : vector<1x32xf32>
    %218 = arith.mulf %209, %189 : vector<1x32xf32>
    %219 = arith.addf %217, %218 : vector<1x32xf32>
    %c6 = arith.constant 6 : index
    %c0_48 = arith.constant 0 : index
    %220 = vector.load %arg14[%c6, %c0_48] : memref<8x32xf32, #tpu.memory_space<vmem>>, vector<1x32xf32>
    tpu.vector_store %arg14[%c6, %c0_48], %219 {strides = array<i32>} : memref<8x32xf32, #tpu.memory_space<vmem>>, vector<1x32xf32>,
    %cst_49 = arith.constant dense<0.000000e+00> : vector<1x96xf32>
    %221 = tpu.matmul %219, %7, %cst_49 {dimension_numbers = #tpu.dot_dimension_numbers<[1], [0], [0], [1], [0, 0, 1, 1], [], []>} : vector<1x32xf32>, vector<32x96xf32>, vector<1x96xf32> -> vector<1x96xf32>
    %222 = arith.addf %221, %8 : vector<1x96xf32>
    %223 = vector.extract_strided_slice %6 {offsets = [7, 0], sizes = [1, 96], strides = [1, 1]} : vector<8x96xf32> to vector<1x96xf32>
    %224 = vector.extract_strided_slice %223 {offsets = [0, 0], sizes = [1, 32], strides = [1, 1]} : vector<1x96xf32> to vector<1x32xf32>
    %225 = vector.extract_strided_slice %222 {offsets = [0, 0], sizes = [1, 32], strides = [1, 1]} : vector<1x96xf32> to vector<1x32xf32>
    %226 = arith.addf %224, %225 : vector<1x32xf32>
    %227 = arith.negf %226 : vector<1x32xf32>
    %228 = math.exp %227 : vector<1x32xf32>
    %cst_50 = arith.constant 1.000000e+00 : f32
    %229 = vector.broadcast %cst_50 : f32 to vector<1x32xf32>
    %230 = arith.addf %229, %228 : vector<1x32xf32>
    %231 = arith.divf %229, %230 : vector<1x32xf32>
    %232 = vector.extract_strided_slice %223 {offsets = [0, 32], sizes = [1, 32], strides = [1, 1]} : vector<1x96xf32> to vector<1x32xf32>
    %233 = vector.extract_strided_slice %222 {offsets = [0, 32], sizes = [1, 32], strides = [1, 1]} : vector<1x96xf32> to vector<1x32xf32>
    %234 = arith.addf %232, %233 : vector<1x32xf32>
    %235 = arith.negf %234 : vector<1x32xf32>
    %236 = math.exp %235 : vector<1x32xf32>
    %cst_51 = arith.constant 1.000000e+00 : f32
    %237 = vector.broadcast %cst_51 : f32 to vector<1x32xf32>
    %238 = arith.addf %237, %236 : vector<1x32xf32>
    %239 = arith.divf %237, %238 : vector<1x32xf32>
    %240 = vector.extract_strided_slice %223 {offsets = [0, 64], sizes = [1, 32], strides = [1, 1]} : vector<1x96xf32> to vector<1x32xf32>
    %241 = vector.extract_strided_slice %222 {offsets = [0, 64], sizes = [1, 32], strides = [1, 1]} : vector<1x96xf32> to vector<1x32xf32>
    %242 = arith.mulf %231, %241 : vector<1x32xf32>
    %243 = arith.addf %240, %242 : vector<1x32xf32>
    %244 = math.tanh %243 : vector<1x32xf32>
    %cst_52 = arith.constant 1.000000e+00 : f32
    %245 = vector.broadcast %cst_52 : f32 to vector<1x32xf32>
    %246 = arith.subf %245, %239 : vector<1x32xf32>
    %247 = arith.mulf %246, %244 : vector<1x32xf32>
    %248 = arith.mulf %239, %219 : vector<1x32xf32>
    %249 = arith.addf %247, %248 : vector<1x32xf32>
    %c7 = arith.constant 7 : index
    %c0_53 = arith.constant 0 : index
    %250 = vector.load %arg14[%c7, %c0_53] : memref<8x32xf32, #tpu.memory_space<vmem>>, vector<1x32xf32>
    tpu.vector_store %arg14[%c7, %c0_53], %249 {strides = array<i32>} : memref<8x32xf32, #tpu.memory_space<vmem>>, vector<1x32xf32>,
    %c0_54 = arith.constant 0 : index
    %c0_55 = arith.constant 0 : index
    %251 = vector.load %arg14[%c0_54, %c0_55] : memref<8x32xf32, #tpu.memory_space<vmem>>, vector<8x32xf32>
    %c0_56 = arith.constant 0 : index
    %c0_57 = arith.constant 0 : index
    %c0_58 = arith.constant 0 : index
    %252 = vector.load %arg3[%c0_56, %c0_57, %c0_58] : memref<1x8x32xf32, #tpu.memory_space<vmem>>, vector<1x8x32xf32>
    %253 = vector.shape_cast %252 : vector<1x8x32xf32> to vector<8x32xf32>
    %cst_59 = arith.constant dense<0.000000e+00> : vector<8x8xf32>
    %254 = tpu.matmul %251, %253, %cst_59 {dimension_numbers = #tpu.dot_dimension_numbers<[1], [1], [0], [0], [0, 0, 1, 0], [], []>} : vector<8x32xf32>, vector<8x32xf32>, vector<8x8xf32> -> vector<8x8xf32>
    %cst_60 = arith.constant dense<0xFF800000> : vector<8xf32>
    %255 = vector.multi_reduction <maximumf>, %254, %cst_60 [1] : vector<8x8xf32> to vector<8xf32>
    %256 = vector.shape_cast %255 : vector<8xf32> to vector<8x1xf32>
    %257 = vector.broadcast %256 : vector<8x1xf32> to vector<8x8xf32>
    %258 = arith.subf %254, %257 : vector<8x8xf32>
    %259 = math.exp %258 : vector<8x8xf32>
    %cst_61 = arith.constant dense<0.000000e+00> : vector<8xf32>
    %260 = vector.multi_reduction <add>, %259, %cst_61 [1] : vector<8x8xf32> to vector<8xf32>
    %261 = vector.shape_cast %260 : vector<8xf32> to vector<8x1xf32>
    %262 = tpu.reciprocal %261 : vector<8x1xf32> -> vector<8x1xf32>
    %263 = vector.broadcast %262 : vector<8x1xf32> to vector<8x8xf32>
    %264 = arith.mulf %259, %263 : vector<8x8xf32>
    %cst_62 = arith.constant dense<0.000000e+00> : vector<8x32xf32>
    %265 = tpu.matmul %264, %253, %cst_62 {dimension_numbers = #tpu.dot_dimension_numbers<[1], [0], [0], [1], [0, 0, 1, 1], [], []>} : vector<8x8xf32>, vector<8x32xf32>, vector<8x32xf32> -> vector<8x32xf32>
    %c0_63 = arith.constant 0 : index
    %c0_64 = arith.constant 0 : index
    %266 = vector.load %arg8[%c0_63, %c0_64] : memref<32x32xf32, #tpu.memory_space<vmem>>, vector<32x32xf32>
    %cst_65 = arith.constant dense<0.000000e+00> : vector<8x32xf32>
    %267 = tpu.matmul %265, %266, %cst_65 {dimension_numbers = #tpu.dot_dimension_numbers<[1], [0], [0], [1], [0, 0, 1, 1], [], []>} : vector<8x32xf32>, vector<32x32xf32>, vector<8x32xf32> -> vector<8x32xf32>
    %c0_66 = arith.constant 0 : index
    %c0_67 = arith.constant 0 : index
    %268 = vector.load %arg9[%c0_66, %c0_67] : memref<32x32xf32, #tpu.memory_space<vmem>>, vector<32x32xf32>
    %cst_68 = arith.constant dense<0.000000e+00> : vector<8x32xf32>
    %269 = tpu.matmul %251, %268, %cst_68 {dimension_numbers = #tpu.dot_dimension_numbers<[1], [0], [0], [1], [0, 0, 1, 1], [], []>} : vector<8x32xf32>, vector<32x32xf32>, vector<8x32xf32> -> vector<8x32xf32>
    %270 = arith.addf %267, %269 : vector<8x32xf32>
    %c0_69 = arith.constant 0 : index
    %c0_70 = arith.constant 0 : index
    %271 = vector.load %arg10[%c0_69, %c0_70] : memref<1x32xf32, #tpu.memory_space<vmem>>, vector<1x32xf32>
    %272 = vector.broadcast %271 : vector<1x32xf32> to vector<8x32xf32>
    %273 = arith.addf %270, %272 : vector<8x32xf32>
    %274 = math.tanh %273 : vector<8x32xf32>
    %c0_71 = arith.constant 0 : index
    %c0_72 = arith.constant 0 : index
    %275 = vector.load %arg11[%c0_71, %c0_72] : memref<32x128xf32, #tpu.memory_space<vmem>>, vector<32x128xf32>
    %cst_73 = arith.constant dense<0.000000e+00> : vector<8x128xf32>
    %276 = tpu.matmul %274, %275, %cst_73 {dimension_numbers = #tpu.dot_dimension_numbers<[1], [0], [0], [1], [0, 0, 1, 1], [], []>} : vector<8x32xf32>, vector<32x128xf32>, vector<8x128xf32> -> vector<8x128xf32>
    %c0_74 = arith.constant 0 : index
    %c0_75 = arith.constant 0 : index
    %277 = vector.load %arg12[%c0_74, %c0_75] : memref<1x128xf32, #tpu.memory_space<vmem>>, vector<1x128xf32>
    %278 = vector.broadcast %277 : vector<1x128xf32> to vector<8x128xf32>
    %279 = arith.addf %276, %278 : vector<8x128xf32>
    %c0_76 = arith.constant 0 : index
    %c0_77 = arith.constant 0 : index
    %c0_78 = arith.constant 0 : index
    %280 = vector.load %arg13[%c0_76, %c0_77, %c0_78] : memref<1x8x128xf32, #tpu.memory_space<vmem>>, vector<1x8x128xf32>
    %281 = vector.shape_cast %280 : vector<1x8x128xf32> to vector<8x128xf32>
    %282 = vector.shape_cast %279 : vector<8x128xf32> to vector<1x8x128xf32>
    tpu.vector_store %arg13[%c0_76, %c0_77, %c0_78], %282 {strides = array<i32>} : memref<1x8x128xf32, #tpu.memory_space<vmem>>, vector<1x8x128xf32>,
    return
  }
  func.func @transform_0(%arg0: i32) -> (i32, i32, i32) {
    %c0_i32 = arith.constant 0 : i32
    %c0_i32_0 = arith.constant 0 : i32
    %c0_i32_1 = arith.constant 0 : i32
    return %arg0, %c0_i32, %c0_i32_0 : i32, i32, i32
  }
  func.func @transform_1(%arg0: i32) -> (i32, i32, i32) {
    %c0_i32 = arith.constant 0 : i32
    %c0_i32_0 = arith.constant 0 : i32
    %c0_i32_1 = arith.constant 0 : i32
    return %arg0, %c0_i32, %c0_i32_0 : i32, i32, i32
  }
  func.func @transform_2(%arg0: i32) -> (i32, i32, i32) {
    %c0_i32 = arith.constant 0 : i32
    %c0_i32_0 = arith.constant 0 : i32
    %c0_i32_1 = arith.constant 0 : i32
    return %arg0, %c0_i32, %c0_i32_0 : i32, i32, i32
  }
  func.func @transform_3(%arg0: i32) -> (i32, i32) {
    %c0_i32 = arith.constant 0 : i32
    %c0_i32_0 = arith.constant 0 : i32
    %c0_i32_1 = arith.constant 0 : i32
    return %c0_i32, %c0_i32_0 : i32, i32
  }
  func.func @transform_4(%arg0: i32) -> (i32, i32) {
    %c0_i32 = arith.constant 0 : i32
    %c0_i32_0 = arith.constant 0 : i32
    %c0_i32_1 = arith.constant 0 : i32
    return %c0_i32, %c0_i32_0 : i32, i32
  }
  func.func @transform_5(%arg0: i32) -> (i32, i32) {
    %c0_i32 = arith.constant 0 : i32
    %c0_i32_0 = arith.constant 0 : i32
    %c0_i32_1 = arith.constant 0 : i32
    return %c0_i32, %c0_i32_0 : i32, i32
  }
  func.func @transform_6(%arg0: i32) -> (i32, i32) {
    %c0_i32 = arith.constant 0 : i32
    %c0_i32_0 = arith.constant 0 : i32
    %c0_i32_1 = arith.constant 0 : i32
    return %c0_i32, %c0_i32_0 : i32, i32
  }
  func.func @transform_7(%arg0: i32) -> (i32, i32) {
    %c0_i32 = arith.constant 0 : i32
    %c0_i32_0 = arith.constant 0 : i32
    %c0_i32_1 = arith.constant 0 : i32
    return %c0_i32, %c0_i32_0 : i32, i32
  }
  func.func @transform_8(%arg0: i32) -> (i32, i32) {
    %c0_i32 = arith.constant 0 : i32
    %c0_i32_0 = arith.constant 0 : i32
    %c0_i32_1 = arith.constant 0 : i32
    return %c0_i32, %c0_i32_0 : i32, i32
  }
  func.func @transform_9(%arg0: i32) -> (i32, i32) {
    %c0_i32 = arith.constant 0 : i32
    %c0_i32_0 = arith.constant 0 : i32
    %c0_i32_1 = arith.constant 0 : i32
    return %c0_i32, %c0_i32_0 : i32, i32
  }
  func.func @transform_10(%arg0: i32) -> (i32, i32) {
    %c0_i32 = arith.constant 0 : i32
    %c0_i32_0 = arith.constant 0 : i32
    %c0_i32_1 = arith.constant 0 : i32
    return %c0_i32, %c0_i32_0 : i32, i32
  }
  func.func @transform_11(%arg0: i32) -> (i32, i32) {
    %c0_i32 = arith.constant 0 : i32
    %c0_i32_0 = arith.constant 0 : i32
    %c0_i32_1 = arith.constant 0 : i32
    return %c0_i32, %c0_i32_0 : i32, i32
  }
  func.func @transform_12(%arg0: i32) -> (i32, i32, i32) {
    %c0_i32 = arith.constant 0 : i32
    %c0_i32_0 = arith.constant 0 : i32
    %c0_i32_1 = arith.constant 0 : i32
    return %arg0, %c0_i32, %c0_i32_0 : i32, i32, i32
  }
}

</mosaic_0001>

<bundles_post_ra>
// kernel: couplets_decode_forward.1
= control target key start
LH: loop header
LB: loop body
LE: loop exit
PB: predicated region body
PF: predicated region fallthrough
CT: control target
= control target key end

     0   :  { %s1876_s0 = inlined_call_operand.vmem [shape: f32[2,8,32], index: 0, kind: input, shape index: {}]   ;;  %s1877_s1 = inlined_call_operand.vmem [shape: f32[2,1,32], index: 1, kind: input, shape index: {}]   ;;  %s1878_s2 = inlined_call_operand.vmem [shape: f32[2,8,32], index: 2, kind: input, shape index: {}]   ;;  %s1879_s3 = inlined_call_operand.vmem [shape: f32[32,96], index: 3, kind: input, shape index: {}]   ;;  %s1880_s4 = inlined_call_operand.vmem [shape: f32[32,96], index: 4, kind: input, shape index: {}]   ;;  %s1881_s5 = inlined_call_operand.vmem [shape: f32[1,96], index: 5, kind: input, shape index: {}]   ;;  %s1882_s6 = inlined_call_operand.vmem [shape: f32[1,96], index: 6, kind: input, shape index: {}]   ;;  %s1883_s7 = inlined_call_operand.vmem [shape: f32[32,32], index: 7, kind: input, shape index: {}]   ;;  %s1884_s8 = inlined_call_operand.vmem [shape: f32[32,32], index: 8, kind: input, shape index: {}]   ;;  %s1885_s9 = inlined_call_operand.vmem [shape: f32[1,32], index: 9, kind: input, shape index: {}]   ;;  %s1886_s10 = inlined_call_operand.vmem [shape: f32[32,128], index: 10, kind: input, shape index: {}]   ;;  %s1887_s11 = inlined_call_operand.vmem [shape: f32[1,128], index: 11, kind: input, shape index: {}]   ;;  %s1888_s12 = inlined_call_operand.hbm [shape: f32[2,8,128], index: 12, kind: output, shape index: {}]  }
   0x1   :  { %1890 = sst [smem:[#allocation8_spill]] %s1876_s0 }
   0x2   :  { %1891 = sst [smem:[#allocation9_spill]] %s1877_s1 }
   0x3   :  { %17 = vsyncpa [#allocation4], 0 }
   0x4   :  { %19 = vsyncpa [#allocation4 + $0x1], 0  ;;  %s1593_s21 = smov 0   ;;  %s1595_s22 = smov 0  }
   0x5   :  { %s1597_s23 = smov 0   ;;  %s1599_s24 = smov 0  }
   0x6 LB: > { %1892 = sst [smem:[#allocation6_spill]] %s1519_s23  ;;  %s1614_s25 = sadd.s32 4294967295, %s1523_s24   ;;  %s1523_s24 = sphi %s1599_s24, %s1902_s24   ;;  %s1519_s23 = sphi %s1597_s23, %s1899_s23   ;;  %s1515_s22 = sphi %s1595_s22, %s1901_s22   ;;  %s1511_s21 = sphi %s1593_s21, %s1900_s21  }
   0x7   : > { %s1327_s26 = sadd.s32 4294967294, %s1523_s24   ;;  %s1618_s27 = sadd.s32 1, %s1523_s24  }
   0x8   : > { %s299_s28 = sadd.s32 1, %s1519_s23  ;;  %s296_s29 = ssub.s32 %s1523_s24, %s1618_s27 }
   0x9   : > { %p309_p0 = scmp.ne.s32.totalorder %s1519_s23, %s1515_s22  ;;  %p297_p1 = scmp.eq.s32.totalorder %s296_s29, 0 }
   0xa   : > { %p310_p2 = scmp.eq.s32.totalorder %s1614_s25, 1  ;;  %p315_p3 = scmp.ne.s32.totalorder %s1515_s22, %s1511_s21 }
   0xb   : > { %p316_p4 = scmp.eq.s32.totalorder %s1327_s26, 1  ;;  %p1330_p7 = scmp.ge.s32.totalorder %s1523_s24, 1 }
   0xc   : > { %s1629_s30 = scalar_select %p297_p1, %s1519_s23, %s299_s28  }
   0xd   : > { %p1631_p5 = por %p310_p2, %p309_p0  ;;  %p1635_p6 = por %p316_p4, %p315_p3 }
   0xe   : > { %1893 = sst [smem:[#allocation7_spill]] %s1629_s30  ;;  %p381_p8 = scmp.lt.s32.totalorder %s1523_s24, 3 }
  0x10   : > { %p382_p9 = pnand %p1330_p7, %p381_p8 }
  0x11   : > { %p429_p10 = scmp.lt.s32.totalorder (!%p382_p9), %s1614_s25, 1  ;;  %s1896_s1 = sld [smem:[#allocation9_spill]] (!%p382_p9) }
  0x12   : > { %385 = sbr.rel (%p382_p9) target bundleno = 5448 (0x1548), region = 68  ;;  %s1897_s0 = sld [smem:[#allocation8_spill]] (!%p382_p9) }
  0x13   : > { %s1526_s16 = smov (!%p382_p9), 96   ;;  %s426_s20 = sand.u32 (!%p382_p9), 1, %s1515_s22  }
  0x14   : > { %s1331_s26 = sshll.u32 (!%p382_p9), %s426_s20, 3  ;;  %s1481_s30 = scalar_lea.hbm (!%p382_p9), %s1888_s12, 16 }
  0x17   : > { %v444_v0 = vld [vmem:[%s1879_s3 + $0x18] sm:$0xff]  ;;  %v443_v2 = vld [vmem:[%s1879_s3 + $0x10] sm:$0xff]  ;;  %v442_v4 = vld [vmem:[%s1879_s3 + $0x8] sm:$0xff]  ;;  %s1661_s17 = scalar_select %p429_p10, %s1614_s25, 1  ;;  %vm449_vm0 = vcmask 261120   ;;  %vm549_vm5 = vcmask 253952  }
  0x18   : > { %v476_v1 = vld [vmem:[%s1880_s4 + $0x18] sm:$0xff]  ;;  %465 = vmatpush.msra.mxu0 %v444_v0  ;;  %v475_v3 = vld [vmem:[%s1880_s4 + $0x10] sm:$0xff]  ;;  %v474_v5 = vld [vmem:[%s1880_s4 + $0x8] sm:$0xff] }
  0x19   : > { %494 = vmatpush.msra.mxu1 %v476_v1  ;;  %565 = vmatpush.msra.mxu2 %v476_v1  ;;  %v441_v6 = vld [vmem:[%s1879_s3] sm:$0xff]  ;;  %s1332_s28 = sshll.u32 %s1661_s17, 3  ;;  %s1674_s15 = scalar_lea.vmem %s1896_s1, %s1661_s17 }
  0x1a   : > { %639 = vmatpush.msra.mxu3 %v476_v1  ;;  %466 = vmatpush.msra.mxu0 %v443_v2  ;;  %v473_v7 = vld [vmem:[%s1880_s4] sm:$0xff]  ;;  %s432_s18 = scalar_lea.vmem %s1897_s0, %s1332_s28  ;;  %s439_s19 = scalar_lea.vmem %s1878_s2, %s1332_s28 }
  0x1b   : > { %495 = vmatpush.msra.mxu1 %v475_v3  ;;  %566 = vmatpush.msra.mxu2 %v475_v3  ;;  %v478_v8 = vld [vmem:[%s1674_s15] sm:$0x1]  ;;  %s1525_s28 = smov 64   ;;  %s428_s17 = scalar_lea.vmem [#allocation3], %s1331_s26 }
  0x1c   : > { %640 = vmatpush.msra.mxu3 %v475_v3  ;;  %467 = vmatpush.msra.mxu0 %v442_v4  ;;  %v440_v9 = vld [vmem:[%s432_s18] sm:$0xff]  ;;  %s1527_s18 = smov 32   ;;  %s1244_s23 = sshll.u32 %s428_s17, 4  ;;  %s1245_s23 = int_to_ptr.vmem [resolvable:$true] %s1244_s23 }
  0x1d   : > { %496 = vmatpush.msra.mxu1 %v474_v5  ;;  %567 = vmatpush.msra.mxu2 %v474_v5  ;;  %v1685_v10 = vld [vmem:[%s439_s19] sm:$0xff]  ;;  %s1232_s0 = scalar_lea.sflag [#allocation4], %s426_s20 }
  0x1e   : > { %641 = vmatpush.msra.mxu3 %v474_v5  ;;  %468 = vmatpush.msra.mxu0 %v441_v6  ;;  %v1692_v11 = vld [vmem:[%s1882_s6] sm:$0x1] }
  0x1f   : > { %497 = vmatpush.msra.mxu1 %v473_v7  ;;  %1334 = vmatmul.msk.f32.vlgmr.msra.gmra.mxu0 %vm449_vm0, %v440_v9  ;;  %v1404_v14 = vld [vmem:[%s1881_s5] ss:$0 sm:$0xff] }
  0x20   : > { %1335 = vmatmul.msk.f32.vlgmr.msra.gmra.mxu1 %vm449_vm0, %v478_v8  ;;  %568 = vmatpush.msra.mxu2 %v473_v7  ;;  %v1403_v36 = vld [vmem:[%s1674_s15] ss:$0 sm:$0xff] }
  0x21   : > { %642 = vmatpush.msra.mxu3 %v473_v7  ;;  %713 = vmatpush.msrb.mxu0 %v476_v1 }
  0x22   : > { %787 = vmatpush.msrb.mxu1 %v476_v1  ;;  %861 = vmatpush.msrb.mxu2 %v476_v1 }
  0x23   : > { %935 = vmatpush.msrb.mxu3 %v476_v1  ;;  %714 = vmatpush.msrb.mxu0 %v475_v3 }
  0x24   : > { %788 = vmatpush.msrb.mxu1 %v475_v3  ;;  %862 = vmatpush.msrb.mxu2 %v475_v3 }
  0x25   : > { %936 = vmatpush.msrb.mxu3 %v475_v3  ;;  %715 = vmatpush.msrb.mxu0 %v474_v5 }
  0x26   : > { %789 = vmatpush.msrb.mxu1 %v474_v5  ;;  %863 = vmatpush.msrb.mxu2 %v474_v5 }
  0x27   : > { %937 = vmatpush.msrb.mxu3 %v474_v5  ;;  %716 = vmatpush.msrb.mxu0 %v473_v7 }
  0x28   : > { %790 = vmatpush.msrb.mxu1 %v473_v7  ;;  %864 = vmatpush.msrb.mxu2 %v473_v7 }
  0x29   : > { %938 = vmatpush.msrb.mxu3 %v473_v7  ;;  %1009 = vmatpush.msra.mxu0 %v476_v1 }
  0x2a   : > { %1351 = vmatpush.xpose.msk.msra.mxu1 %vm449_vm0, %v1685_v10 }
  0x2b   : > { %1010 = vmatpush.msra.mxu0 %v475_v3 }
  0x2d   : > { %1011 = vmatpush.msra.mxu0 %v474_v5 }
  0x2f   : > { %1012 = vmatpush.msra.mxu0 %v473_v7 }
  0x9c   : > { %v470_v15 = vpop.f32.mrf.mxu0 }
  0x9d   : > { %v499_v12 = vpop.f32.mrf.mxu1  ;;  %v1699_v16 = vadd.f32 %v1404_v14, %v470_v15 }
  0x9e   : > { %v500_v13 = vadd.f32 %v499_v12, %v1692_v11 }
  0xa0   : > { %523 = vrot.lane.b32.xlu0 %v500_v13, %s1525_s28  ;;  %v502_v17 = vadd.f32 %v500_v13, %v1699_v16 }
  0xa2   : > { %v1336_v18 = vmul.f32 -1.442695, %v502_v17 }
  0xa4   : > { %1407 = vpow2.f32 %v1336_v18 }
  0xaa   : > { %v1408_v19 = vpop.eup %1407 }
  0xab   : > { %v506_v20 = vadd.f32 1.0, %v1408_v19 }
  0xad   : > { %1409 = vrcp.f32 %v506_v20  ;;  %v518_v26 = vand.u32 2147483648, %v506_v20  ;;  %vm512_vm2 = vweird.f32 %v506_v20  ;;  %v516_v27 = vand.u32 2147483647, %v506_v20 }
  0xaf   : > { %v519_v29 = vor.u32 1.1754944e-38, %v518_v26  ;;  %vm517_vm4 = vcmp.eq.f32.partialorder %v516_v27, 8.507059e+37 }
  0xb3   : > { %v1410_v21 = vpop.eup %1409 }
  0xb4   : > { %v508_v22 = vmul.f32 %v1410_v21, %v506_v20  ;;  %vm513_vm1 = vweird.f32 %v1410_v21 }
  0xb5   : > { %vm514_vm3 = vmor %vm512_vm2, %vm513_vm1 }
  0xb6   : > { %v509_v23 = vsub.f32 1.0, %v508_v22 }
  0xb8   : > { %v510_v24 = vmul.f32 %v1410_v21, %v509_v23 }
  0xba   : > { %v511_v25 = vadd.f32 %v1410_v21, %v510_v24 }
  0xbc   : > { %v515_v28 = vsel %vm514_vm3, %v1410_v21, %v511_v25 }
  0xbd   : > { %v520_v31 = vsel %vm517_vm4, %v519_v29, %v515_v28 }
  0xbe   : > { %v533_v38 = vsub.f32 1.0, %v520_v31 }
 0x112   : > { %v524_v30 = vpop.permute.xlu0 %523 }
 0x113   : > { %v526_v32 = vmul.f32 %v524_v30, %v520_v31 }
 0x115   : > { %528 = vrot.lane.b32.xlu0 %v526_v32, %s1525_s28 }
 0x187   : > { %v529_v33 = vpop.permute.xlu0 %528 }
 0x188   : > { %v531_v34 = vadd.f32 %v529_v33, %v1699_v16 }
 0x18a   : > { %1411 = vtanh.f32 %v531_v34 }
 0x190   : > { %v1412_v35 = vpop.eup %1411 }
 0x191   : > { %535 = vrot.lane.b32.xlu1 %v1412_v35, %s1526_s16 }
 0x199   : > { %540 = vrot.lane.b32.xlu1 %v1403_v36, %s1527_s18 }
 0x203   : > { %v536_v37 = vpop.permute.xlu1 %535 }
 0x204   : > { %v538_v40 = vmul.f32 %v536_v37, %v533_v38 }
 0x20b   : > { %v541_v39 = vpop.permute.xlu1 %540 }
 0x20c   : > { %v543_v41 = vmul.f32 %v541_v39, %v520_v31 }
 0x20e   : > { %v544_v42 = vadd.f32 %v543_v41, %v538_v40 }
 0x210   : > { %546 = vrot.lane.b32.xlu2 %v544_v42, %s1526_s16  ;;  %v612_v59 = vrot.slane %v544_v42, 7 }
 0x26a   : > { %v547_v43 = vpop.permute.xlu2 %546 }
 0x26b   : > { %550 = vst.msk [vmem:[#allocation2] sm:$0x1] %vm549_vm5, %v547_v43  ;;  %1337 = vmatmul.msk.f32.vlgmr.msra.gmra.mxu2 %vm449_vm0, %v547_v43 }
 0x26c   : > { %1137 = vmatpush.msra.mxu2 %v1685_v10 }
 0x2ee   : > { %v570_v44 = vpop.f32.mrf.mxu2 }
 0x2ef   : > { %v571_v45 = vadd.f32 %v570_v44, %v1692_v11 }
 0x2f1   : > { %v574_v46 = vrot.slane %v571_v45, 7 }
 0x2f3   : > { %v576_v47 = vadd.f32 %v574_v46, %v1699_v16  ;;  %596 = vrot.lane.b32.xlu2 %v574_v46, %s1525_s28 }
 0x2f5   : > { %v1338_v48 = vmul.f32 -1.442695, %v576_v47 }
 0x2f7   : > { %1413 = vpow2.f32 %v1338_v48 }
 0x2fd   : > { %v1414_v49 = vpop.eup %1413 }
 0x2fe   : > { %v580_v50 = vadd.f32 1.0, %v1414_v49 }
 0x300   : > { %1415 = vrcp.f32 %v580_v50  ;;  %v592_v54 = vand.u32 2147483648, %v580_v50  ;;  %v590_v56 = vand.u32 2147483647, %v580_v50  ;;  %vm586_vm7 = vweird.f32 %v580_v50 }
 0x302   : > { %v593_v58 = vor.u32 1.1754944e-38, %v592_v54  ;;  %vm591_vm9 = vcmp.eq.f32.partialorder %v590_v56, 8.507059e+37 }
 0x306   : > { %v1416_v51 = vpop.eup %1415 }
 0x307   : > { %v582_v52 = vmul.f32 %v1416_v51, %v580_v50  ;;  %vm587_vm6 = vweird.f32 %v1416_v51 }
 0x308   : > { %vm588_vm8 = vmor %vm586_vm7, %vm587_vm6 }
 0x309   : > { %v583_v53 = vsub.f32 1.0, %v582_v52 }
 0x30b   : > { %v584_v55 = vmul.f32 %v1416_v51, %v583_v53 }
 0x30d   : > { %v585_v57 = vadd.f32 %v1416_v51, %v584_v55 }
 0x30f   : > { %v589_v60 = vsel %vm588_vm8, %v1416_v51, %v585_v57 }
 0x310   : > { %v594_v61 = vsel %vm591_vm9, %v593_v58, %v589_v60 }
 0x311   : > { %v614_v62 = vmul.f32 %v612_v59, %v594_v61  ;;  %v606_v4 = vsub.f32 1.0, %v594_v61 }
 0x34d   : > { %v597_v63 = vpop.permute.xlu2 %596 }
 0x34e   : > { %v599_v0 = vmul.f32 %v597_v63, %v594_v61 }
 0x350   : > { %601 = vrot.lane.b32.xlu0 %v599_v0, %s1525_s28 }
 0x3c2   : > { %v602_v1 = vpop.permute.xlu0 %601 }
 0x3c3   : > { %v604_v2 = vadd.f32 %v602_v1, %v1699_v16 }
 0x3c5   : > { %1417 = vtanh.f32 %v604_v2 }
 0x3cb   : > { %v1418_v3 = vpop.eup %1417 }
 0x3cc   : > { %608 = vrot.lane.b32.xlu1 %v1418_v3, %s1526_s16 }
 0x43e   : > { %v609_v5 = vpop.permute.xlu1 %608 }
 0x43f   : > { %v611_v6 = vmul.f32 %v609_v5, %v606_v4 }
 0x441   : > { %v1715_v7 = vadd.f32 %v614_v62, %v611_v6 }
 0x443   : > { %v622_v8 = vrot.slane %v1715_v7, 1  ;;  %v686_v35 = vrot.slane %v1715_v7, 7 }
 0x445   : > { %623 = vrot.lane.b32.xlu2 %v622_v8, %s1526_s16 }
 0x49f   : > { %v624_v9 = vpop.permute.xlu2 %623 }
 0x4a0   : > { %1339 = vmatmul.msk.f32.vlgmr.msra.gmra.mxu3 %vm449_vm0, %v624_v9 }
 0x523   : > { %v644_v10 = vpop.f32.mrf.mxu3 }
 0x524   : > { %v645_v12 = vadd.f32 %v644_v10, %v1692_v11 }
 0x526   : > { %v648_v13 = vrot.slane %v645_v12, 6 }
 0x528   : > { %670 = vrot.lane.b32.xlu0 %v648_v13, %s1525_s28  ;;  %v650_v14 = vadd.f32 %v648_v13, %v1699_v16 }
 0x52a   : > { %v1340_v15 = vmul.f32 -1.442695, %v650_v14 }
 0x52c   : > { %1419 = vpow2.f32 %v1340_v15 }
 0x532   : > { %v1420_v17 = vpop.eup %1419 }
 0x533   : > { %v654_v18 = vadd.f32 1.0, %v1420_v17 }
 0x535   : > { %1421 = vrcp.f32 %v654_v18  ;;  %v666_v24 = vand.u32 2147483648, %v654_v18  ;;  %vm660_vm11 = vweird.f32 %v654_v18  ;;  %v664_v25 = vand.u32 2147483647, %v654_v18 }
 0x537   : > { %v667_v27 = vor.u32 1.1754944e-38, %v666_v24  ;;  %vm665_vm13 = vcmp.eq.f32.partialorder %v664_v25, 8.507059e+37 }
 0x53b   : > { %v1422_v19 = vpop.eup %1421 }
 0x53c   : > { %v656_v20 = vmul.f32 %v1422_v19, %v654_v18  ;;  %vm661_vm10 = vweird.f32 %v1422_v19 }
 0x53d   : > { %vm662_vm12 = vmor %vm660_vm11, %vm661_vm10 }
 0x53e   : > { %v657_v21 = vsub.f32 1.0, %v656_v20 }
 0x540   : > { %v658_v22 = vmul.f32 %v1422_v19, %v657_v21 }
 0x542   : > { %v659_v23 = vadd.f32 %v1422_v19, %v658_v22 }
 0x544   : > { %v663_v26 = vsel %vm662_vm12, %v1422_v19, %v659_v23 }
 0x545   : > { %v668_v29 = vsel %vm665_vm13, %v667_v27, %v663_v26 }
 0x546   : > { %v680_v34 = vsub.f32 1.0, %v668_v29  ;;  %v688_v37 = vmul.f32 %v686_v35, %v668_v29 }
 0x59a   : > { %v671_v28 = vpop.permute.xlu0 %670 }
 0x59b   : > { %v673_v30 = vmul.f32 %v671_v28, %v668_v29 }
 0x59d   : > { %675 = vrot.lane.b32.xlu1 %v673_v30, %s1525_s28 }
 0x60f   : > { %v676_v31 = vpop.permute.xlu1 %675 }
 0x610   : > { %v678_v32 = vadd.f32 %v676_v31, %v1699_v16 }
 0x612   : > { %1423 = vtanh.f32 %v678_v32 }
 0x618   : > { %v1424_v33 = vpop.eup %1423 }
 0x619   : > { %682 = vrot.lane.b32.xlu2 %v1424_v33, %s1526_s16 }
 0x673   : > { %v683_v36 = vpop.permute.xlu2 %682 }
 0x674   : > { %v685_v38 = vmul.f32 %v683_v36, %v680_v34 }
 0x676   : > { %v1727_v39 = vadd.f32 %v688_v37, %v685_v38 }
 0x678   : > { %v696_v40 = vrot.slane %v1727_v39, 2  ;;  %v760_v1 = vrot.slane %v1727_v39, 7 }
 0x67a   : > { %697 = vrot.lane.b32.xlu0 %v696_v40, %s1526_s16 }
 0x6ec   : > { %v698_v41 = vpop.permute.xlu0 %697 }
 0x6ed   : > { %1341 = vmatmul.msk.f32.vlgmr.msrb.gmra.mxu0 %vm449_vm0, %v698_v41 }
 0x76a   : > { %v718_v42 = vpop.f32.mrf.mxu0 }
 0x76b   : > { %v719_v43 = vadd.f32 %v718_v42, %v1692_v11 }
 0x76d   : > { %v722_v44 = vrot.slane %v719_v43, 5 }
 0x76f   : > { %744 = vrot.lane.b32.xlu1 %v722_v44, %s1525_s28  ;;  %v724_v45 = vadd.f32 %v722_v44, %v1699_v16 }
 0x771   : > { %v1342_v46 = vmul.f32 -1.442695, %v724_v45 }
 0x773   : > { %1425 = vpow2.f32 %v1342_v46 }
 0x779   : > { %v1426_v47 = vpop.eup %1425 }
 0x77a   : > { %v728_v48 = vadd.f32 1.0, %v1426_v47 }
 0x77c   : > { %1427 = vrcp.f32 %v728_v48  ;;  %v740_v54 = vand.u32 2147483648, %v728_v48  ;;  %vm734_vm15 = vweird.f32 %v728_v48  ;;  %v738_v55 = vand.u32 2147483647, %v728_v48 }
 0x77e   : > { %v741_v57 = vor.u32 1.1754944e-38, %v740_v54  ;;  %vm739_vm2 = vcmp.eq.f32.partialorder %v738_v55, 8.507059e+37 }
 0x782   : > { %v1428_v49 = vpop.eup %1427 }
 0x783   : > { %v730_v50 = vmul.f32 %v1428_v49, %v728_v48  ;;  %vm735_vm14 = vweird.f32 %v1428_v49 }
 0x784   : > { %vm736_vm1 = vmor %vm734_vm15, %vm735_vm14 }
 0x785   : > { %v731_v51 = vsub.f32 1.0, %v730_v50 }
 0x787   : > { %v732_v52 = vmul.f32 %v1428_v49, %v731_v51 }
 0x789   : > { %v733_v53 = vadd.f32 %v1428_v49, %v732_v52 }
 0x78b   : > { %v737_v56 = vsel %vm736_vm1, %v1428_v49, %v733_v53 }
 0x78c   : > { %v742_v59 = vsel %vm739_vm2, %v741_v57, %v737_v56 }
 0x78d   : > { %v754_v0 = vsub.f32 1.0, %v742_v59  ;;  %v762_v3 = vmul.f32 %v760_v1, %v742_v59 }
 0x7e1   : > { %v745_v58 = vpop.permute.xlu1 %744 }
 0x7e2   : > { %v747_v60 = vmul.f32 %v745_v58, %v742_v59 }
 0x7e4   : > { %749 = vrot.lane.b32.xlu2 %v747_v60, %s1525_s28 }
 0x83e   : > { %v750_v61 = vpop.permute.xlu2 %749 }
 0x83f   : > { %v752_v62 = vadd.f32 %v750_v61, %v1699_v16 }
 0x841   : > { %1429 = vtanh.f32 %v752_v62 }
 0x847   : > { %v1430_v63 = vpop.eup %1429 }
 0x848   : > { %756 = vrot.lane.b32.xlu0 %v1430_v63, %s1526_s16 }
 0x8ba   : > { %v757_v2 = vpop.permute.xlu0 %756 }
 0x8bb   : > { %v759_v4 = vmul.f32 %v757_v2, %v754_v0 }
 0x8bd   : > { %v1739_v5 = vadd.f32 %v762_v3, %v759_v4 }
 0x8bf   : > { %v770_v6 = vrot.slane %v1739_v5, 3  ;;  %v834_v34 = vrot.slane %v1739_v5, 7 }
 0x8c1   : > { %771 = vrot.lane.b32.xlu1 %v770_v6, %s1526_s16 }
 0x933   : > { %v772_v8 = vpop.permute.xlu1 %771 }
 0x934   : > { %1343 = vmatmul.msk.f32.vlgmr.msrb.gmra.mxu1 %vm449_vm0, %v772_v8 }
 0x9b1   : > { %v792_v9 = vpop.f32.mrf.mxu1 }
 0x9b2   : > { %v793_v10 = vadd.f32 %v792_v9, %v1692_v11 }
 0x9b4   : > { %v796_v12 = vrot.slane %v793_v10, 4 }
 0x9b6   : > { %818 = vrot.lane.b32.xlu2 %v796_v12, %s1525_s28  ;;  %v798_v13 = vadd.f32 %v796_v12, %v1699_v16 }
 0x9b8   : > { %v1344_v14 = vmul.f32 -1.442695, %v798_v13 }
 0x9ba   : > { %1431 = vpow2.f32 %v1344_v14 }
 0x9c0   : > { %v1432_v15 = vpop.eup %1431 }
 0x9c1   : > { %v802_v17 = vadd.f32 1.0, %v1432_v15 }
 0x9c3   : > { %1433 = vrcp.f32 %v802_v17  ;;  %v814_v23 = vand.u32 2147483648, %v802_v17  ;;  %vm808_vm4 = vweird.f32 %v802_v17  ;;  %v812_v24 = vand.u32 2147483647, %v802_v17 }
 0x9c5   : > { %v815_v26 = vor.u32 1.1754944e-38, %v814_v23  ;;  %vm813_vm6 = vcmp.eq.f32.partialorder %v812_v24, 8.507059e+37 }
 0x9c9   : > { %v1434_v18 = vpop.eup %1433 }
 0x9ca   : > { %v804_v19 = vmul.f32 %v1434_v18, %v802_v17  ;;  %vm809_vm3 = vweird.f32 %v1434_v18 }
 0x9cb   : > { %vm810_vm5 = vmor %vm808_vm4, %vm809_vm3  ;;  %vm620_vm4 = vcmask 254977  }
 0x9cc   : > { %v805_v20 = vsub.f32 1.0, %v804_v19 }
 0x9ce   : > { %v806_v21 = vmul.f32 %v1434_v18, %v805_v20 }
 0x9d0   : > { %v807_v22 = vadd.f32 %v1434_v18, %v806_v21 }
 0x9d2   : > { %v811_v25 = vsel %vm810_vm5, %v1434_v18, %v807_v22  ;;  %vm842_vm5 = vcmask 258052  }
 0x9d3   : > { %v816_v28 = vsel %vm813_vm6, %v815_v26, %v811_v25  ;;  %vm694_vm6 = vcmask 256002  }
 0x9d4   : > { %v828_v33 = vsub.f32 1.0, %v816_v28  ;;  %v836_v36 = vmul.f32 %v834_v34, %v816_v28 }
 0xa10   : > { %v819_v27 = vpop.permute.xlu2 %818 }
 0xa11   : > { %v821_v29 = vmul.f32 %v819_v27, %v816_v28 }
 0xa13   : > { %823 = vrot.lane.b32.xlu0 %v821_v29, %s1525_s28 }
 0xa85   : > { %v824_v30 = vpop.permute.xlu0 %823 }
 0xa86   : > { %v826_v31 = vadd.f32 %v824_v30, %v1699_v16 }
 0xa88   : > { %1435 = vtanh.f32 %v826_v31 }
 0xa8e   : > { %v1436_v32 = vpop.eup %1435 }
 0xa8f   : > { %830 = vrot.lane.b32.xlu1 %v1436_v32, %s1526_s16 }
 0xb01   : > { %v831_v35 = vpop.permute.xlu1 %830 }
 0xb02   : > { %v833_v37 = vmul.f32 %v831_v35, %v828_v33 }
 0xb04   : > { %v1751_v38 = vadd.f32 %v836_v36, %v833_v37 }
 0xb06   : > { %v844_v40 = vrot.slane %v1751_v38, 4  ;;  %v908_v1 = vrot.slane %v1751_v38, 7 }
 0xb08   : > { %845 = vrot.lane.b32.xlu2 %v844_v40, %s1526_s16 }
 0xb62   : > { %v846_v41 = vpop.permute.xlu2 %845 }
 0xb63   : > { %1345 = vmatmul.msk.f32.vlgmr.msrb.gmra.mxu2 %vm449_vm0, %v846_v41 }
 0xbe6   : > { %v866_v42 = vpop.f32.mrf.mxu2 }
 0xbe7   : > { %v867_v43 = vadd.f32 %v866_v42, %v1692_v11 }
 0xbe9   : > { %v870_v44 = vrot.slane %v867_v43, 3 }
 0xbeb   : > { %892 = vrot.lane.b32.xlu0 %v870_v44, %s1525_s28  ;;  %v872_v45 = vadd.f32 %v870_v44, %v1699_v16 }
 0xbed   : > { %v1346_v46 = vmul.f32 -1.442695, %v872_v45 }
 0xbef   : > { %1437 = vpow2.f32 %v1346_v46 }
 0xbf5   : > { %v1438_v47 = vpop.eup %1437 }
 0xbf6   : > { %v876_v48 = vadd.f32 1.0, %v1438_v47 }
 0xbf8   : > { %1439 = vrcp.f32 %v876_v48  ;;  %v888_v54 = vand.u32 2147483648, %v876_v48  ;;  %vm882_vm8 = vweird.f32 %v876_v48  ;;  %v886_v55 = vand.u32 2147483647, %v876_v48 }
 0xbfa   : > { %v889_v57 = vor.u32 1.1754944e-38, %v888_v54  ;;  %vm887_vm10 = vcmp.eq.f32.partialorder %v886_v55, 8.507059e+37 }
 0xbfe   : > { %v1440_v49 = vpop.eup %1439 }
 0xbff   : > { %v878_v50 = vmul.f32 %v1440_v49, %v876_v48  ;;  %vm883_vm7 = vweird.f32 %v1440_v49 }
 0xc00   : > { %vm884_vm9 = vmor %vm882_vm8, %vm883_vm7  ;;  %vm916_vm7 = vcmask 259077   ;;  %vm768_vm8 = vcmask 257027  }
 0xc01   : > { %v879_v51 = vsub.f32 1.0, %v878_v50 }
 0xc03   : > { %v880_v52 = vmul.f32 %v1440_v49, %v879_v51 }
 0xc05   : > { %v881_v53 = vadd.f32 %v1440_v49, %v880_v52 }
 0xc07   : > { %v885_v56 = vsel %vm884_vm9, %v1440_v49, %v881_v53  ;;  %vm990_vm9 = vcmask 260102  }
 0xc08   : > { %v890_v59 = vsel %vm887_vm10, %v889_v57, %v885_v56  ;;  %vm1064_vm10 = vcmask 261127  }
 0xc09   : > { %v902_v0 = vsub.f32 1.0, %v890_v59  ;;  %v910_v3 = vmul.f32 %v908_v1, %v890_v59 }
 0xc5d   : > { %v893_v58 = vpop.permute.xlu0 %892 }
 0xc5e   : > { %v895_v60 = vmul.f32 %v893_v58, %v890_v59 }
 0xc60   : > { %897 = vrot.lane.b32.xlu1 %v895_v60, %s1525_s28 }
 0xcd2   : > { %v898_v61 = vpop.permute.xlu1 %897 }
 0xcd3   : > { %v900_v62 = vadd.f32 %v898_v61, %v1699_v16 }
 0xcd5   : > { %1441 = vtanh.f32 %v900_v62 }
 0xcdb   : > { %v1442_v63 = vpop.eup %1441 }
 0xcdc   : > { %904 = vrot.lane.b32.xlu2 %v1442_v63, %s1526_s16 }
 0xd36   : > { %v905_v2 = vpop.permute.xlu2 %904 }
 0xd37   : > { %v907_v4 = vmul.f32 %v905_v2, %v902_v0 }
 0xd39   : > { %v1763_v6 = vadd.f32 %v910_v3, %v907_v4 }
 0xd3b   : > { %v918_v8 = vrot.slane %v1763_v6, 5  ;;  %v982_v35 = vrot.slane %v1763_v6, 7 }
 0xd3d   : > { %919 = vrot.lane.b32.xlu0 %v918_v8, %s1526_s16 }
 0xdaf   : > { %v920_v9 = vpop.permute.xlu0 %919 }
 0xdb0   : > { %1347 = vmatmul.msk.f32.vlgmr.msrb.gmra.mxu3 %vm449_vm0, %v920_v9 }
 0xe33   : > { %v940_v10 = vpop.f32.mrf.mxu3 }
 0xe34   : > { %v941_v12 = vadd.f32 %v940_v10, %v1692_v11 }
 0xe36   : > { %v944_v13 = vrot.slane %v941_v12, 2  ;;  %v1148_v12 = vld [vmem:[%s1884_s8 + $0x10] sm:$0xff] }
 0xe38   : > { %966 = vrot.lane.b32.xlu1 %v944_v13, %s1525_s28  ;;  %v946_v14 = vadd.f32 %v944_v13, %v1699_v16  ;;  %v1147_v13 = vld [vmem:[%s1884_s8 + $0x8] sm:$0xff] }
 0xe3a   : > { %v1348_v15 = vmul.f32 -1.442695, %v946_v14  ;;  %v1146_v14 = vld [vmem:[%s1884_s8] sm:$0xff] }
 0xe3c   : > { %1443 = vpow2.f32 %v1348_v15 }
 0xe42   : > { %v1444_v17 = vpop.eup %1443 }
 0xe43   : > { %v950_v18 = vadd.f32 1.0, %v1444_v17 }
 0xe45   : > { %1445 = vrcp.f32 %v950_v18  ;;  %v962_v24 = vand.u32 2147483648, %v950_v18  ;;  %vm956_vm12 = vweird.f32 %v950_v18  ;;  %v960_v25 = vand.u32 2147483647, %v950_v18 }
 0xe47   : > { %v963_v27 = vor.u32 1.1754944e-38, %v962_v24  ;;  %vm961_vm14 = vcmp.eq.f32.partialorder %v960_v25, 8.507059e+37  ;;  %v1145_v25 = vld [vmem:[%s1883_s7 + $0x18] sm:$0xff] }
 0xe48   : > { %1185 = vmatpush.msrb.mxu0 %v1145_v25 }
 0xe4b   : > { %v1446_v19 = vpop.eup %1445 }
 0xe4c   : > { %v952_v20 = vmul.f32 %v1446_v19, %v950_v18  ;;  %vm957_vm11 = vweird.f32 %v1446_v19 }
 0xe4d   : > { %vm958_vm13 = vmor %vm956_vm12, %vm957_vm11  ;;  %vm1094_vm11 = vcmask 64512  }
 0xe4e   : > { %v953_v21 = vsub.f32 1.0, %v952_v20 }
 0xe50   : > { %v954_v22 = vmul.f32 %v1446_v19, %v953_v21 }
 0xe52   : > { %v955_v23 = vadd.f32 %v1446_v19, %v954_v22 }
 0xe54   : > { %v959_v26 = vsel %vm958_vm13, %v1446_v19, %v955_v23 }
 0xe55   : > { %v964_v29 = vsel %vm961_vm14, %v963_v27, %v959_v26  ;;  %v1144_v26 = vld [vmem:[%s1883_s7 + $0x10] sm:$0xff]  ;;  %v1143_v27 = vld [vmem:[%s1883_s7 + $0x8] sm:$0xff] }
 0xe56   : > { %v976_v34 = vsub.f32 1.0, %v964_v29  ;;  %v984_v37 = vmul.f32 %v982_v35, %v964_v29  ;;  %1186 = vmatpush.msrb.mxu0 %v1144_v26 }
 0xe58   : > { %1187 = vmatpush.msrb.mxu0 %v1143_v27 }
 0xeaa   : > { %v967_v28 = vpop.permute.xlu1 %966 }
 0xeab   : > { %v969_v30 = vmul.f32 %v967_v28, %v964_v29  ;;  %v1142_v28 = vld [vmem:[%s1883_s7] sm:$0xff] }
 0xeac   : > { %1188 = vmatpush.msrb.mxu0 %v1142_v28 }
 0xead   : > { %971 = vrot.lane.b32.xlu2 %v969_v30, %s1525_s28 }
 0xf07   : > { %v972_v31 = vpop.permute.xlu2 %971 }
 0xf08   : > { %v974_v32 = vadd.f32 %v972_v31, %v1699_v16 }
 0xf0a   : > { %1447 = vtanh.f32 %v974_v32 }
 0xf10   : > { %v1448_v33 = vpop.eup %1447 }
 0xf11   : > { %978 = vrot.lane.b32.xlu0 %v1448_v33, %s1526_s16 }
 0xf83   : > { %v979_v36 = vpop.permute.xlu0 %978 }
 0xf84   : > { %v981_v40 = vmul.f32 %v979_v36, %v976_v34 }
 0xf86   : > { %v985_v41 = vadd.f32 %v984_v37, %v981_v40 }
 0xf88   : > { %v992_v42 = vrot.slane %v985_v41, 6  ;;  %v1056_v3 = vrot.slane %v985_v41, 7 }
 0xf8a   : > { %993 = vrot.lane.b32.xlu1 %v992_v42, %s1526_s16 }
 0xffc   : > { %v994_v43 = vpop.permute.xlu1 %993 }
 0xffd   : > { %1349 = vmatmul.msk.f32.vlgmr.msra.gmra.mxu0 %vm449_vm0, %v994_v43 }
0x107a   : > { %v1014_v44 = vpop.f32.mrf.mxu0 }
0x107b   : > { %v1015_v45 = vadd.f32 %v1014_v44, %v1692_v11  ;;  %v1202_v44 = vld [vmem:[%s1886_s10 + $0x18] sm:$0xff] }
0x107c   : > { %1222 = vmatpush.msrb.mxu1 %v1202_v44 }
0x107d   : > { %v1018_v46 = vrot.slane %v1015_v45, 1  ;;  %v1201_v45 = vld [vmem:[%s1886_s10 + $0x10] sm:$0xff] }
0x107e   : > { %1223 = vmatpush.msrb.mxu1 %v1201_v45 }
0x107f   : > { %1040 = vrot.lane.b32.xlu2 %v1018_v46, %s1525_s28  ;;  %v1020_v47 = vadd.f32 %v1018_v46, %v1699_v16  ;;  %v1200_v46 = vld [vmem:[%s1886_s10 + $0x8] sm:$0xff] }
0x1080   : > { %1224 = vmatpush.msrb.mxu1 %v1200_v46 }
0x1081   : > { %v1350_v48 = vmul.f32 -1.442695, %v1020_v47  ;;  %v1199_v47 = vld [vmem:[%s1886_s10] sm:$0xff] }
0x1082   : > { %1225 = vmatpush.msrb.mxu1 %v1199_v47 }
0x1083   : > { %1449 = vpow2.f32 %v1350_v48  ;;  %v1405_v48 = vld [vmem:[%s1885_s9] ss:$0 sm:$0xff] }
0x1087   : > { %617 = vrot.lane.b32.xlu2 %v1715_v7, %s1526_s16 }
0x1089   : > { %v1450_v49 = vpop.eup %1449 }
0x108a   : > { %v1024_v50 = vadd.f32 1.0, %v1450_v49 }
0x108c   : > { %1451 = vrcp.f32 %v1024_v50  ;;  %v1036_v55 = vand.u32 2147483648, %v1024_v50  ;;  %vm1030_vm1 = vweird.f32 %v1024_v50  ;;  %v1034_v56 = vand.u32 2147483647, %v1024_v50 }
0x108e   : > { %v1037_v57 = vor.u32 1.1754944e-38, %v1036_v55  ;;  %vm1035_vm3 = vcmp.eq.f32.partialorder %v1034_v56, 8.507059e+37 }
0x108f   : > { %839 = vrot.lane.b32.xlu2 %v1751_v38, %s1526_s16 }
0x1092   : > { %v1452_v51 = vpop.eup %1451 }
0x1093   : > { %v1026_v52 = vmul.f32 %v1452_v51, %v1024_v50  ;;  %vm1031_vm15 = vweird.f32 %v1452_v51 }
0x1094   : > { %vm1032_vm2 = vmor %vm1030_vm1, %vm1031_vm15 }
0x1095   : > { %v1027_v53 = vsub.f32 1.0, %v1026_v52 }
0x1097   : > { %v1028_v11 = vmul.f32 %v1452_v51, %v1027_v53 }
0x1099   : > { %v1029_v54 = vadd.f32 %v1452_v51, %v1028_v11  ;;  %v1406_v11 = vld [vmem:[%s1887_s11] ss:$0 sm:$0xff] }
0x109b   : > { %v1033_v7 = vsel %vm1032_vm2, %v1452_v51, %v1029_v54 }
0x109c   : > { %v1038_v58 = vsel %vm1035_vm3, %v1037_v57, %v1033_v7 }
0x10d9   : > { %v1041_v38 = vpop.permute.xlu2 %1040 }
0x10da   : > { %v1043_v59 = vmul.f32 %v1041_v38, %v1038_v58 }
0x10dc   : > { %1045 = vrot.lane.b32.xlu0 %v1043_v59, %s1525_s28  ;;  %s1358_s28 = sshll.u32 %s1614_s25, 3 }
0x10e1   : > { %v618_v60 = vpop.permute.xlu2 %617 }
0x10e2   : > { %621 = vst.msk [vmem:[#allocation2] sm:$0x2] %vm620_vm4, %v618_v60 }
0x10e4   : > { %691 = vrot.lane.b32.xlu0 %v1727_v39, %s1526_s16  ;;  %v1050_v39 = vsub.f32 1.0, %v1038_v58 }
0x10e9   : > { %v840_v61 = vpop.permute.xlu2 %839 }
0x10ea   : > { %843 = vst.msk [vmem:[#allocation2] sm:$0x10] %vm842_vm5, %v840_v61 }
0x10ec   : > { %913 = vrot.lane.b32.xlu0 %v1763_v6, %s1526_s16  ;;  %v1058_v6 = vmul.f32 %v1056_v3, %v1038_v58 }
0x114e   : > { %v1046_v62 = vpop.permute.xlu0 %1045 }
0x114f   : > { %v1048_v63 = vadd.f32 %v1046_v62, %v1699_v16 }
0x1151   : > { %1453 = vtanh.f32 %v1048_v63 }
0x1156   : > { %v692_v0 = vpop.permute.xlu0 %691 }
0x1157   : > { %v1454_v1 = vpop.eup %1453  ;;  %695 = vst.msk [vmem:[#allocation2] sm:$0x4] %vm694_vm6, %v692_v0 }
0x1158   : > { %1052 = vrot.lane.b32.xlu1 %v1454_v1, %s1526_s16 }
0x115e   : > { %v914_v2 = vpop.permute.xlu0 %913 }
0x115f   : > { %917 = vst.msk [vmem:[#allocation2] sm:$0x20] %vm916_vm7, %v914_v2 }
0x1160   : > { %765 = vrot.lane.b32.xlu1 %v1739_v5, %s1526_s16  ;;  %v1149_v5 = vld [vmem:[%s1884_s8 + $0x18] sm:$0xff] }
0x1161   : > { %1162 = vmatpush.msra.mxu3 %v1149_v5 }
0x1163   : > { %1163 = vmatpush.msra.mxu3 %v1148_v12 }
0x1165   : > { %1164 = vmatpush.msra.mxu3 %v1147_v13 }
0x1167   : > { %1165 = vmatpush.msra.mxu3 %v1146_v14 }
0x1168   : > { %987 = vrot.lane.b32.xlu1 %v985_v41, %s1526_s16 }
0x11ca   : > { %v1053_v4 = vpop.permute.xlu1 %1052 }
0x11cb   : > { %v1055_v16 = vmul.f32 %v1053_v4, %v1050_v39 }
0x11cd   : > { %v1059_v8 = vadd.f32 %v1058_v6, %v1055_v16 }
0x11cf   : > { %1061 = vrot.lane.b32.xlu2 %v1059_v8, %s1526_s16  ;;  %s1242_s16 = scalar_lea.hbm %s1888_s12, %s1358_s28 }
0x11d0   : > { %s1246_s19 = sshll.u32 %s1242_s16, 4  ;;  %s1247_s19 = int_to_ptr.hbm [resolvable:$true] %s1246_s19 }
0x11d1   : > { %s1475_s1 = sshra.s32 %s1247_s19, 4  ;;  %s1476_s1 = int_to_ptr.hbm [resolvable:$true] %s1475_s1 }
0x11d2   : > { %v766_v9 = vpop.permute.xlu1 %765  ;;  %s1477_s25 = scalar_lea.hbm %s1476_s1, 8  ;;  %p1482_p0 = scmp.lt.s32.totalorder %s1476_s1, %s1888_s12 }
0x11d3   : > { %769 = vst.msk [vmem:[#allocation2] sm:$0x8] %vm768_vm8, %v766_v9  ;;  %p1478_p11 = scmp.ne.s32.totalorder %s1476_s1, %s1477_s25  ;;  %p1483_p1 = scmp.lt.s32.totalorder %s1481_s30, %s1477_s25 }
0x11d5   : > { %p1479_p12 = pnand %p1478_p11, %p1631_p5  ;;  %p1484_p2 = por %p1483_p1, %p1482_p0 }
0x11d7   : > { %p1480_p13 = pneg %p1479_p12 }
0x11d9   : > { %p1485_p3 = pnand %p1484_p2, %p1480_p13 }
0x11da   : > { %v988_v10 = vpop.permute.xlu1 %987 }
0x11db   : > { %991 = vst.msk [vmem:[#allocation2] sm:$0x40] %vm990_vm9, %v988_v10 }
0x1229   : > { %v1062_v15 = vpop.permute.xlu2 %1061 }
0x122a   : > { %1065 = vst.msk [vmem:[#allocation2] sm:$0x80] %vm1064_vm10, %v1062_v15 }
0x1231   : > { %v1066_v17 = vld [vmem:[#allocation2] sm:$0xff] }
0x1232   : > { %1352 = vmatmul.msk.f32.vlgmr.msra.gmra.mxu1 %vm449_vm0, %v1066_v17  ;;  %1354 = vmatmul.msk.f32.vlgmr.msra.gmra.mxu3 %vm449_vm0, %v1066_v17 }
0x12af   : > { %v1091_v18 = vpop.f32.mrf.mxu1 }
0x12b0   : > { %v1095_v19 = vsel %vm1094_vm11, %v1091_v18, -inf }
0x12b1   : > { %1096 = vmax.xlane.f32.xlu0 %v1095_v19 }
0x12b5   : > { %v1167_v49 = vpop.f32.mrf.mxu3 }
0x1324   : > { %v1097_v20 = vpop.xlane.xlu0 %1096 }
0x1325   : > { %v1098_v21 = vsub.f32 %v1091_v18, %v1097_v20 }
0x1327   : > { %v1099_v22 = vmul.f32 1.442695, %v1098_v21 }
0x1329   : > { %1455 = vpow2.f32 %v1099_v22 }
0x132f   : > { %v1456_v23 = vpop.eup %1455 }
0x1330   : > { %v1101_v24 = vsel %vm1094_vm11, %v1456_v23, 0.0 }
0x1331   : > { %1102 = vadd.xlane.f32.xlu1 %v1101_v24 }
0x13a4   : > { %v1103_v29 = vpop.xlane.xlu1 %1102 }
0x13a5   : > { %1457 = vrcp.f32 %v1103_v29  ;;  %v1115_v33 = vand.u32 2147483648, %v1103_v29  ;;  %v1113_v35 = vand.u32 2147483647, %v1103_v29  ;;  %vm1109_vm13 = vweird.f32 %v1103_v29 }
0x13a7   : > { %v1116_v37 = vor.u32 1.1754944e-38, %v1115_v33  ;;  %vm1114_vm15 = vcmp.eq.f32.partialorder %v1113_v35, 8.507059e+37 }
0x13ab   : > { %v1458_v30 = vpop.eup %1457 }
0x13ac   : > { %v1105_v31 = vmul.f32 %v1458_v30, %v1103_v29  ;;  %vm1110_vm12 = vweird.f32 %v1458_v30 }
0x13ad   : > { %vm1111_vm14 = vmor %vm1109_vm13, %vm1110_vm12 }
0x13ae   : > { %v1106_v32 = vsub.f32 1.0, %v1105_v31 }
0x13b0   : > { %v1107_v34 = vmul.f32 %v1458_v30, %v1106_v32 }
0x13b2   : > { %v1108_v36 = vadd.f32 %v1458_v30, %v1107_v34 }
0x13b4   : > { %v1112_v40 = vsel %vm1111_vm14, %v1458_v30, %v1108_v36 }
0x13b5   : > { %v1117_v41 = vsel %vm1114_vm15, %v1116_v37, %v1112_v40 }
0x13b6   : > { %v1118_v42 = vmul.f32 %v1456_v23, %v1117_v41 }
0x13b8   : > { %1353 = vmatmul.msk.f32.vlgmr.msra.gmra.mxu2 %vm1094_vm11, %v1118_v42 }
0x143b   : > { %v1139_v43 = vpop.f32.mrf.mxu2 }
0x143c   : > { %1355 = vmatmul.msk.f32.vlgmr.msrb.gmra.mxu0 %vm449_vm0, %v1139_v43 }
0x14b9   : > { %v1190_v50 = vpop.f32.mrf.mxu0 }
0x14ba   : > { %v1191_v51 = vadd.f32 %v1190_v50, %v1167_v49 }
0x14bc   : > { %v1197_v52 = vadd.f32 %v1405_v48, %v1191_v51 }
0x14be   : > { %1459 = vtanh.f32 %v1197_v52 }
0x14c4   : > { %v1460_v53 = vpop.eup %1459 }
0x14c5   : > { %1356 = vmatmul.msk.f32.vlgmr.msrb.gmra.mxu1 %vm449_vm0, %v1460_v53 }
0x1542   : > { %v1227_v54 = vpop.f32.mrf.mxu1 }
0x1543   : > { %v1228_v55 = vadd.f32 %v1406_v11, %v1227_v54 }
0x1545   : > { %1230 = vst [vmem:[%s428_s17] sm:$0xff] %v1228_v55 }
0x1546   : > { %1488 = shalt.err (!%p1485_p3)
}
0x1547   : > { %1361 = dma.vmem_to_hbm [thread:$0]  (%p1631_p5), %s1245_s23, 128, %s1247_s19, %s1232_s0  }
0x1548 PF: > { %p1367_p4 = scmp.ge.s32.totalorder %s1523_s24, 2  ;;  %s1258_s20 = sand.u32 1, %s1511_s21  }
0x1549   : > { %s1259_s16 = scalar_lea.sflag [#allocation4], %s1258_s20 }
0x154a   : > { %p1364_p7 = pnand %p1367_p4, %p1635_p6 }
0x154c   : > { %p1365_p8 = pneg %p1364_p7 }
0x154e   : > { %1506 = dma.done.wait (%p1365_p8), %s1259_s16, 128  }
0x154f   : > { %1508 = vsyncadd (%p1365_p8), %s1259_s16, 4294967168  ;;  %s1898_s1 = sld [smem:[#allocation6_spill]]  ;;  %p22_p9 = scmp.ge.s32.totalorder %s1618_s27, 4  }
0x1550   : > { %s1899_s23 = sld [smem:[#allocation7_spill]]  ;;  %s1900_s21 = smov %s1515_s22 }
0x1551   : > { %s1902_s24 = smov %s1618_s27  ;;  %24 = sbr.rel (!%p22_p9) target bundleno = 6 (0x6), region = 109 }
0x1555   : > { %s1901_s22 = smov %s1898_s1 }
0x1556   :  { %1265 = vsyncpa [#allocation4], 1 }
0x1557   :  { %1267 = vsyncpa [#allocation4 + $0x1], 1 }

</bundles_post_ra>
